<compile_context>
chip_gen: v7x
topology: tpu7x:2x2x1
jax: 0.10.0
libtpu: 0.0.40
codegen_flags: <defaults>
</compile_context>

<pallas_src>
import jax
import jax.numpy as jnp
from jax import lax
from jax.experimental import pallas as pl
from jax.experimental.pallas import tpu as pltpu


VMEM_STEP_BUDGET = 20 << 20   # per-grid-step working-set budget (safe on all gens)
VMEM_LIMIT_BYTES = 32 << 20   # raise v5e's 16 MiB default; == default on v6e/v7x


def da_kernel(q_ref, feat_ref, a_ref,
              wv_ref, bv_ref, wq_ref, wc_ref, benc_ref, wa_ref,
              out_ref):
    tb, n_dim = q_ref.shape
    tbn, _ = feat_ref.shape
    n_reg = tbn // tb

    q = q_ref[...]                                        # (TB, D)    f32
    a = a_ref[...]                                        # (C, TB, D) f32

    # --- Encoder ---
    # Region projection: one flat bf16 MXU matmul over all TB*N regions,
    # f32 accumulate. feat was flattened & cast in the wrapper, so there is
    # no in-kernel reshape of the large tile.
    v2d = jnp.dot(feat_ref[...], wv_ref[...],
                  preferred_element_type=jnp.float32) + bv_ref[...]   # (TB*N, D)
    v = v2d.reshape(tb, n_reg, n_dim)                                 # (TB, N, D)

    # Dot-product attention of pooled question over regions.
    # VPU multiply + lane reduce; no transposes, no M=1 matmuls.
    scores = jnp.sum(q[:, None, :] * v, axis=-1)                      # (TB, N)
    m = jnp.max(scores, axis=-1, keepdims=True)
    e = jnp.exp(scores - m)                                           # (TB, N)
    # Deferred softmax normalization: accumulate context with unnormalized
    # weights, scale once with an approx reciprocal on the (idle) EUP slot.
    ctx = jnp.sum(e[:, :, None] * v, axis=1)                          # (TB, D)
    ctx = ctx * pl.reciprocal(jnp.sum(e, axis=-1, keepdims=True), approx=True)

    # "Fixed subspaces" layer: two tiny MXU matmuls instead of a concat
    # (avoids any cross-lane relayout; MXU is nearly idle at these shapes).
    h = jnp.tanh(jnp.dot(q, wq_ref[...], preferred_element_type=jnp.float32)
                 + jnp.dot(ctx, wc_ref[...], preferred_element_type=jnp.float32)
                 + benc_ref[...])                                     # (TB, D)

    # --- Decoder: score each answer candidate ---
    # (a @ W_a) . h == a . (h contracted with W_a's output axis).
    hW = lax.dot_general(h, wa_ref[...], (((1,), (1,)), ((), ())),
                         preferred_element_type=jnp.float32)          # (TB, D)
    # Lane-dense transposed output block: batch on the lane axis.
    out_ref[...] = jnp.sum(hW[None, :, :] * a, axis=-1)               # (C, TB)


def _is_dual_tensorcore():
    """Best-effort detection of parts with 2 TensorCores sharing the grid."""
    try:
        kind = jax.devices()[0].device_kind.lower()
        return ("v7" in kind) or ("v4" in kind) or ("v5p" in kind)
    except Exception:
        return False


def _choose_tile_b(B, N, image_dim, n_dim, C, budget_bytes, dual_core):
    """Pick the batch tile.

    Legal tiles (so every BlockSpec satisfies the (8,128) rule including the
    transposed lane-dense output): tile_b == B, or a divisor of B that is a
    multiple of 128. Single-TC parts prefer one grid step; dual-TC parts
    prefer an even number of >= 2 steps.
    """
    def step_bytes(tb):
        feat = 2 * tb * N * image_dim * 2                  # bf16, double-buffered
        qin = 2 * tb * n_dim * 4
        ain = 2 * C * tb * n_dim * 4
        outb = 2 * C * tb * 4
        temps = 3 * tb * N * n_dim * 4 + 8 * tb * n_dim * 4
        weights = 2 * (image_dim * n_dim * 2 + 3 * n_dim * n_dim * 4 + 2 * n_dim * 4)
        return feat + qin + ain + outb + temps + weights

    cands = sorted({B} | {t for t in range(128, B, 128) if B % t == 0})
    fits = [t for t in cands if step_bytes(t) <= budget_bytes]
    if not fits:
        fits = cands[:1]           # nothing fits the budget: smallest legal tile
    if dual_core:
        even = [t for t in fits if (B // t) >= 2 and (B // t) % 2 == 0]
        if even:
            return max(even)
    return max(fits)


def da_forward(que, answers, feat, params):
    """que: (B, Lq) int32; answers: (B, C, La) int32; feat: (B, N, image_dim) f32."""
    emb = params["embedding"]          # (V, n_dim)
    n_dim = emb.shape[1]
    B, N, image_dim = feat.shape
    C = answers.shape[1]

    # Glue: embedding lookup + mean pooling (data-dependent gather stays in JAX).
    q_pool = jnp.mean(jnp.take(emb, que, axis=0), axis=1)             # (B, D)
    a_pool = jnp.mean(jnp.take(emb, answers, axis=0), axis=2)         # (B, C, D)
    a_poolT = jnp.transpose(a_pool, (1, 0, 2))                        # (C, B, D)

    # feat dominates HBM traffic: flatten once (explicit MXU operand layout,
    # no in-kernel reshape/copy of the big tile) and cast to bf16 with W_v.
    feat2d = feat.reshape(B * N, image_dim).astype(jnp.bfloat16)
    w_v = params["W_v"].astype(jnp.bfloat16)

    tile_b = _choose_tile_b(B, N, image_dim, n_dim, C,
                            budget_bytes=VMEM_STEP_BUDGET,
                            dual_core=_is_dual_tensorcore())
    grid = (B // tile_b,)

    grid_spec = pltpu.PrefetchScalarGridSpec(
        num_scalar_prefetch=0,
        grid=grid,
        in_specs=[
            pl.BlockSpec((tile_b, n_dim),         lambda b: (b, 0)),
            pl.BlockSpec((tile_b * N, image_dim), lambda b: (b, 0)),
            pl.BlockSpec((C, tile_b, n_dim),      lambda b: (0, b, 0)),
            pl.BlockSpec((image_dim, n_dim),      lambda b: (0, 0)),
            pl.BlockSpec((1, n_dim),              lambda b: (0, 0)),
            pl.BlockSpec((n_dim, n_dim),          lambda b: (0, 0)),
            pl.BlockSpec((n_dim, n_dim),          lambda b: (0, 0)),
            pl.BlockSpec((1, n_dim),              lambda b: (0, 0)),
            pl.BlockSpec((n_dim, n_dim),          lambda b: (0, 0)),
        ],
        out_specs=pl.BlockSpec((C, tile_b), lambda b: (0, b)),
    )

    out_t = pl.pallas_call(
        da_kernel,
        out_shape=jax.ShapeDtypeStruct((C, B), jnp.float32),
        grid_spec=grid_spec,
        compiler_params=pltpu.CompilerParams(
            dimension_semantics=("parallel",),
            vmem_limit_bytes=VMEM_LIMIT_BYTES),
    )(q_pool, feat2d, a_poolT,
      w_v, params["b_v"], params["W_q"], params["W_c"],
      params["b_enc"], params["W_a"])

    return out_t.T                                                    # (B, C)


def da_forward_ref(que, answers, feat, params):
    """Pure-JAX (full f32) reference for correctness checking."""
    emb = params["embedding"]
    q = jnp.mean(jnp.take(emb, que, axis=0), axis=1)                  # (B, D)
    a = jnp.mean(jnp.take(emb, answers, axis=0), axis=2)              # (B, C, D)
    v = jnp.einsum("bnd,dk->bnk", feat, params["W_v"]) + params["b_v"]
    scores = jnp.einsum("bk,bnk->bn", q, v)
    att = jax.nn.softmax(scores, axis=-1)
    ctx = jnp.einsum("bn,bnk->bk", att, v)
    h = jnp.tanh(q @ params["W_q"] + ctx @ params["W_c"] + params["b_enc"])
    a_proj = jnp.einsum("bck,kj->bcj", a, params["W_a"])
    return jnp.einsum("bj,bcj->bc", h, a_proj)


def init_params(key, vocab_size, n_dim, image_dim):
    ks = jax.random.split(key, 6)
    s = 0.05
    return {
        "embedding": s * jax.random.normal(ks[0], (vocab_size, n_dim), jnp.float32),
        "W_v":       s * jax.random.normal(ks[1], (image_dim, n_dim), jnp.float32),
        "b_v":       jnp.zeros((1, n_dim), jnp.float32),
        "W_q":       s * jax.random.normal(ks[2], (n_dim, n_dim), jnp.float32),
        "W_c":       s * jax.random.normal(ks[3], (n_dim, n_dim), jnp.float32),
        "b_enc":     jnp.zeros((1, n_dim), jnp.float32),
        "W_a":       s * jax.random.normal(ks[4], (n_dim, n_dim), jnp.float32),
    }


if __name__ == "__main__":
    # Small shapes consistent with the module's constructor.
    B, Lq, La, C = 16, 8, 4, 5          # batch, question len, answer len, num_choice
    vocab_size, n_dim, image_dim, N = 100, 32, 64, 16   # N = image regions

    key = jax.random.PRNGKey(0)
    k_p, k_q, k_a, k_f = jax.random.split(key, 4)

    params = init_params(k_p, vocab_size, n_dim, image_dim)
    que = jax.random.randint(k_q, (B, Lq), 0, vocab_size, dtype=jnp.int32)
    answers = jax.random.randint(k_a, (B, C, La), 0, vocab_size, dtype=jnp.int32)
    feat = jax.random.normal(k_f, (B, N, image_dim), jnp.float32)

    out = jax.block_until_ready(da_forward(que, answers, feat, params))
    ref = jax.block_until_ready(da_forward_ref(que, answers, feat, params))

    assert out.shape == (B, C), out.shape
    assert jnp.all(jnp.isfinite(out))
    # Tolerances loosened for bf16 feat/W_v matmul and approx EUP reciprocal.
    assert jnp.allclose(out, ref, rtol=5e-2, atol=2e-4), (out, ref)
    print("KERNEL_OK")
</pallas_src>

<mosaic_0001>
module attributes {stable_mosaic.version = 11 : i64} {
  func.func @da_kernel(%arg0: i32, %arg1: memref<16x32xf32, #tpu.memory_space<vmem>>, %arg2: memref<256x64xbf16, #tpu.memory_space<vmem>>, %arg3: memref<5x16x32xf32, #tpu.memory_space<vmem>>, %arg4: memref<64x32xbf16, #tpu.memory_space<vmem>>, %arg5: memref<1x32xf32, #tpu.memory_space<vmem>>, %arg6: memref<32x32xf32, #tpu.memory_space<vmem>>, %arg7: memref<32x32xf32, #tpu.memory_space<vmem>>, %arg8: memref<1x32xf32, #tpu.memory_space<vmem>>, %arg9: memref<32x32xf32, #tpu.memory_space<vmem>>, %arg10: memref<5x16xf32, #tpu.memory_space<vmem>>) attributes {dimension_semantics = [#tpu.dimension_semantics<parallel>], iteration_bounds = array<i64: 1>, scalar_prefetch = 0 : i64, scratch_operands = 0 : i64, tpu.core_type = #tpu.core_type<tc>, window_params = [{transform_indices = @transform_0, window_bounds = array<i64: 16, 32>}, {transform_indices = @transform_1, window_bounds = array<i64: 256, 64>}, {transform_indices = @transform_2, window_bounds = array<i64: 5, 16, 32>}, {pipeline_mode = #tpu.pipeline_mode<synchronous>, transform_indices = @transform_3, window_bounds = array<i64: 64, 32>}, {pipeline_mode = #tpu.pipeline_mode<synchronous>, transform_indices = @transform_4, window_bounds = array<i64: 1, 32>}, {pipeline_mode = #tpu.pipeline_mode<synchronous>, transform_indices = @transform_5, window_bounds = array<i64: 32, 32>}, {pipeline_mode = #tpu.pipeline_mode<synchronous>, transform_indices = @transform_6, window_bounds = array<i64: 32, 32>}, {pipeline_mode = #tpu.pipeline_mode<synchronous>, transform_indices = @transform_7, window_bounds = array<i64: 1, 32>}, {pipeline_mode = #tpu.pipeline_mode<synchronous>, transform_indices = @transform_8, window_bounds = array<i64: 32, 32>}, {transform_indices = @transform_9, window_bounds = array<i64: 5, 16>}]} {
    %c0 = arith.constant 0 : index
    %c0_0 = arith.constant 0 : index
    %0 = vector.load %arg1[%c0, %c0_0] : memref<16x32xf32, #tpu.memory_space<vmem>>, vector<16x32xf32>
    %c0_1 = arith.constant 0 : index
    %c0_2 = arith.constant 0 : index
    %c0_3 = arith.constant 0 : index
    %1 = vector.load %arg3[%c0_1, %c0_2, %c0_3] : memref<5x16x32xf32, #tpu.memory_space<vmem>>, vector<5x16x32xf32>
    %c0_4 = arith.constant 0 : index
    %c0_5 = arith.constant 0 : index
    %2 = vector.load %arg2[%c0_4, %c0_5] : memref<256x64xbf16, #tpu.memory_space<vmem>>, vector<256x64xbf16>
    %c0_6 = arith.constant 0 : index
    %c0_7 = arith.constant 0 : index
    %3 = vector.load %arg4[%c0_6, %c0_7] : memref<64x32xbf16, #tpu.memory_space<vmem>>, vector<64x32xbf16>
    %cst = arith.constant dense<0.000000e+00> : vector<256x32xf32>
    %4 = tpu.matmul %2, %3, %cst {dimension_numbers = #tpu.dot_dimension_numbers<[1], [0], [0], [1], [0, 0, 1, 1], [], []>} : vector<256x64xbf16>, vector<64x32xbf16>, vector<256x32xf32> -> vector<256x32xf32>
    %c0_8 = arith.constant 0 : index
    %c0_9 = arith.constant 0 : index
    %5 = vector.load %arg5[%c0_8, %c0_9] : memref<1x32xf32, #tpu.memory_space<vmem>>, vector<1x32xf32>
    %6 = vector.broadcast %5 : vector<1x32xf32> to vector<256x32xf32>
    %7 = arith.addf %4, %6 : vector<256x32xf32>
    %8 = vector.shape_cast %7 : vector<256x32xf32> to vector<16x16x32xf32>
    %9 = vector.shape_cast %0 : vector<16x32xf32> to vector<16x1x32xf32>
    %10 = vector.broadcast %9 : vector<16x1x32xf32> to vector<16x16x32xf32>
    %11 = arith.mulf %10, %8 : vector<16x16x32xf32>
    %cst_10 = arith.constant dense<0.000000e+00> : vector<16x16xf32>
    %12 = vector.multi_reduction <add>, %11, %cst_10 [2] : vector<16x16x32xf32> to vector<16x16xf32>
    %cst_11 = arith.constant dense<0xFF800000> : vector<16xf32>
    %13 = vector.multi_reduction <maximumf>, %12, %cst_11 [1] : vector<16x16xf32> to vector<16xf32>
    %14 = vector.shape_cast %13 : vector<16xf32> to vector<16x1xf32>
    %15 = vector.broadcast %14 : vector<16x1xf32> to vector<16x16xf32>
    %16 = arith.subf %12, %15 : vector<16x16xf32>
    %17 = math.exp %16 : vector<16x16xf32>
    %18 = vector.shape_cast %17 : vector<16x16xf32> to vector<16x16x1xf32>
    %19 = vector.broadcast %18 : vector<16x16x1xf32> to vector<16x16x32xf32>
    %20 = arith.mulf %19, %8 : vector<16x16x32xf32>
    %cst_12 = arith.constant dense<0.000000e+00> : vector<16x32xf32>
    %21 = vector.multi_reduction <add>, %20, %cst_12 [1] : vector<16x16x32xf32> to vector<16x32xf32>
    %cst_13 = arith.constant dense<0.000000e+00> : vector<16xf32>
    %22 = vector.multi_reduction <add>, %17, %cst_13 [1] : vector<16x16xf32> to vector<16xf32>
    %23 = vector.shape_cast %22 : vector<16xf32> to vector<16x1xf32>
    %24 = tpu.reciprocal %23 {approx = true} : vector<16x1xf32> -> vector<16x1xf32>
    %25 = vector.broadcast %24 : vector<16x1xf32> to vector<16x32xf32>
    %26 = arith.mulf %21, %25 : vector<16x32xf32>
    %c0_14 = arith.constant 0 : index
    %c0_15 = arith.constant 0 : index
    %27 = vector.load %arg6[%c0_14, %c0_15] : memref<32x32xf32, #tpu.memory_space<vmem>>, vector<32x32xf32>
    %cst_16 = arith.constant dense<0.000000e+00> : vector<16x32xf32>
    %28 = tpu.matmul %0, %27, %cst_16 {dimension_numbers = #tpu.dot_dimension_numbers<[1], [0], [0], [1], [0, 0, 1, 1], [], []>} : vector<16x32xf32>, vector<32x32xf32>, vector<16x32xf32> -> vector<16x32xf32>
    %c0_17 = arith.constant 0 : index
    %c0_18 = arith.constant 0 : index
    %29 = vector.load %arg7[%c0_17, %c0_18] : memref<32x32xf32, #tpu.memory_space<vmem>>, vector<32x32xf32>
    %cst_19 = arith.constant dense<0.000000e+00> : vector<16x32xf32>
    %30 = tpu.matmul %26, %29, %cst_19 {dimension_numbers = #tpu.dot_dimension_numbers<[1], [0], [0], [1], [0, 0, 1, 1], [], []>} : vector<16x32xf32>, vector<32x32xf32>, vector<16x32xf32> -> vector<16x32xf32>
    %31 = arith.addf %28, %30 : vector<16x32xf32>
    %c0_20 = arith.constant 0 : index
    %c0_21 = arith.constant 0 : index
    %32 = vector.load %arg8[%c0_20, %c0_21] : memref<1x32xf32, #tpu.memory_space<vmem>>, vector<1x32xf32>
    %33 = vector.broadcast %32 : vector<1x32xf32> to vector<16x32xf32>
    %34 = arith.addf %31, %33 : vector<16x32xf32>
    %35 = math.tanh %34 : vector<16x32xf32>
    %c0_22 = arith.constant 0 : index
    %c0_23 = arith.constant 0 : index
    %36 = vector.load %arg9[%c0_22, %c0_23] : memref<32x32xf32, #tpu.memory_space<vmem>>, vector<32x32xf32>
    %cst_24 = arith.constant dense<0.000000e+00> : vector<16x32xf32>
    %37 = tpu.matmul %35, %36, %cst_24 {dimension_numbers = #tpu.dot_dimension_numbers<[1], [1], [0], [0], [0, 0, 1, 0], [], []>} : vector<16x32xf32>, vector<32x32xf32>, vector<16x32xf32> -> vector<16x32xf32>
    %38 = vector.shape_cast %37 : vector<16x32xf32> to vector<1x16x32xf32>
    %39 = vector.broadcast %38 : vector<1x16x32xf32> to vector<5x16x32xf32>
    %40 = arith.mulf %39, %1 : vector<5x16x32xf32>
    %cst_25 = arith.constant dense<0.000000e+00> : vector<5x16xf32>
    %41 = vector.multi_reduction <add>, %40, %cst_25 [2] : vector<5x16x32xf32> to vector<5x16xf32>
    %c0_26 = arith.constant 0 : index
    %c0_27 = arith.constant 0 : index
    %42 = vector.load %arg10[%c0_26, %c0_27] : memref<5x16xf32, #tpu.memory_space<vmem>>, vector<5x16xf32>
    tpu.vector_store %arg10[%c0_26, %c0_27], %41 {strides = array<i32>} : memref<5x16xf32, #tpu.memory_space<vmem>>, vector<5x16xf32>,
    return
  }
  func.func @transform_0(%arg0: i32) -> (i32, i32) {
    %c0_i32 = arith.constant 0 : i32
    %c0_i32_0 = arith.constant 0 : i32
    return %arg0, %c0_i32 : i32, i32
  }
  func.func @transform_1(%arg0: i32) -> (i32, i32) {
    %c0_i32 = arith.constant 0 : i32
    %c0_i32_0 = arith.constant 0 : i32
    return %arg0, %c0_i32 : i32, i32
  }
  func.func @transform_2(%arg0: i32) -> (i32, i32, i32) {
    %c0_i32 = arith.constant 0 : i32
    %c0_i32_0 = arith.constant 0 : i32
    %c0_i32_1 = arith.constant 0 : i32
    return %c0_i32, %arg0, %c0_i32_0 : i32, i32, i32
  }
  func.func @transform_3(%arg0: i32) -> (i32, i32) {
    %c0_i32 = arith.constant 0 : i32
    %c0_i32_0 = arith.constant 0 : i32
    %c0_i32_1 = arith.constant 0 : i32
    return %c0_i32, %c0_i32_0 : i32, i32
  }
  func.func @transform_4(%arg0: i32) -> (i32, i32) {
    %c0_i32 = arith.constant 0 : i32
    %c0_i32_0 = arith.constant 0 : i32
    %c0_i32_1 = arith.constant 0 : i32
    return %c0_i32, %c0_i32_0 : i32, i32
  }
  func.func @transform_5(%arg0: i32) -> (i32, i32) {
    %c0_i32 = arith.constant 0 : i32
    %c0_i32_0 = arith.constant 0 : i32
    %c0_i32_1 = arith.constant 0 : i32
    return %c0_i32, %c0_i32_0 : i32, i32
  }
  func.func @transform_6(%arg0: i32) -> (i32, i32) {
    %c0_i32 = arith.constant 0 : i32
    %c0_i32_0 = arith.constant 0 : i32
    %c0_i32_1 = arith.constant 0 : i32
    return %c0_i32, %c0_i32_0 : i32, i32
  }
  func.func @transform_7(%arg0: i32) -> (i32, i32) {
    %c0_i32 = arith.constant 0 : i32
    %c0_i32_0 = arith.constant 0 : i32
    %c0_i32_1 = arith.constant 0 : i32
    return %c0_i32, %c0_i32_0 : i32, i32
  }
  func.func @transform_8(%arg0: i32) -> (i32, i32) {
    %c0_i32 = arith.constant 0 : i32
    %c0_i32_0 = arith.constant 0 : i32
    %c0_i32_1 = arith.constant 0 : i32
    return %c0_i32, %c0_i32_0 : i32, i32
  }
  func.func @transform_9(%arg0: i32) -> (i32, i32) {
    %c0_i32 = arith.constant 0 : i32
    %c0_i32_0 = arith.constant 0 : i32
    return %c0_i32, %arg0 : i32, i32
  }
}

</mosaic_0001>

<bundles_post_ra>
// kernel: tpu_custom_call.1
= control target key start
LH: loop header
LB: loop body
LE: loop exit
PB: predicated region body
PF: predicated region fallthrough
CT: control target
= control target key end

     0   :  { %vm197_vm0 = vcmask 523264   ;;  %s3397_s0 = inlined_call_operand.vmem [shape: f32[16,32], index: 0, kind: input, shape index: {}]   ;;  %s3398_s1 = inlined_call_operand.vmem [shape: bf16[256,64], index: 1, kind: input, shape index: {}]   ;;  %s3399_s2 = inlined_call_operand.vmem [shape: f32[5,16,32], index: 2, kind: input, shape index: {}]   ;;  %s3400_s3 = inlined_call_operand.vmem [shape: bf16[64,32], index: 3, kind: input, shape index: {}]   ;;  %s3401_s4 = inlined_call_operand.vmem [shape: f32[1,32], index: 4, kind: input, shape index: {}]   ;;  %s3402_s5 = inlined_call_operand.vmem [shape: f32[32,32], index: 5, kind: input, shape index: {}]   ;;  %s3403_s6 = inlined_call_operand.vmem [shape: f32[32,32], index: 6, kind: input, shape index: {}]   ;;  %s3404_s7 = inlined_call_operand.vmem [shape: f32[1,32], index: 7, kind: input, shape index: {}]   ;;  %s3405_s8 = inlined_call_operand.vmem [shape: f32[32,32], index: 8, kind: input, shape index: {}]   ;;  %s3406_s9 = inlined_call_operand.hbm [shape: f32[5,16], index: 9, kind: output, shape index: {}]  }
   0x1   :  { %v2292_v0 = vld [vmem:[%s3400_s3] sm:$0xff]   ;;  %v2293_v1 = vld [vmem:[%s3400_s3 + $0x8] sm:$0xff]   ;;  %v2294_v2 = vld [vmem:[%s3400_s3 + $0x10] sm:$0xff]  }
   0x2   :  { %2176 = vmatprep.subr.bf16.mxu0 %v2292_v0  ;;  %2277 = vmatprep.subr.bf16.mxu1 %v2292_v0  ;;  %v2296_v3 = vld [vmem:[%s3398_s1] sm:$0xff]   ;;  %v2295_v5 = vld [vmem:[%s3400_s3 + $0x18] sm:$0xff]   ;;  %v2298_v6 = vld [vmem:[%s3398_s1 + $0x8] sm:$0xff]  }
   0x3   :  { %2177 = vmatpush3.bf16.msra.mxu0 %v2292_v0  ;;  %2281 = vmatpush3.bf16.msra.mxu1 %v2292_v0  ;;  %v2297_v4 = vld [vmem:[%s3398_s1 + $0x60] sm:$0xff]   ;;  %v2299_v7 = vld [vmem:[%s3398_s1 + $0x68] sm:$0xff]   ;;  %v2300_v8 = vld [vmem:[%s3398_s1 + $0x10] sm:$0xff]  }
   0x4   :  { %2178 = vmatprep.subr.bf16.mxu0 %v2293_v1  ;;  %2278 = vmatprep.subr.bf16.mxu1 %v2293_v1  ;;  %v2310_v9 = vld [vmem:[%s3398_s1 + $0x70] sm:$0xff]  }
   0x5   :  { %2184 = vmatprep.mubr.msk.bf16.mxu0 %vm197_vm0, %v2296_v3  ;;  %2208 = vmatprep.mubr.msk.bf16.mxu1 %vm197_vm0, %v2297_v4 }
   0x7   :  { %2179 = vmatpush3.bf16.msra.mxu0 %v2293_v1  ;;  %2282 = vmatpush3.bf16.msra.mxu1 %v2293_v1 }
   0x8   :  { %2180 = vmatprep.subr.bf16.mxu0 %v2294_v2  ;;  %2279 = vmatprep.subr.bf16.mxu1 %v2294_v2 }
   0xb   :  { %2181 = vmatpush3.bf16.msra.mxu0 %v2294_v2  ;;  %2283 = vmatpush3.bf16.msra.mxu1 %v2294_v2 }
   0xc   :  { %2182 = vmatprep.subr.bf16.mxu0 %v2295_v5  ;;  %2280 = vmatprep.subr.bf16.mxu1 %v2295_v5 }
   0xf   :  { %2183 = vmatpush3.bf16.msra.mxu0 %v2295_v5  ;;  %2284 = vmatpush3.bf16.msra.mxu1 %v2295_v5 }
  0x12   :  { %2185 = vmatmul.mubr.msk.bf16.vlgmr.msra.gmra.mrb[0].mxu0 %vm197_vm0, %v2298_v6  ;;  %2209 = vmatmul.mubr.msk.bf16.vlgmr.msra.gmra.mrb[0].mxu1 %vm197_vm0, %v2299_v7 }
  0x13   :  { %2188 = vmatprep.mubr.msk.bf16.mxu0 %vm197_vm0, %v2300_v8  ;;  %2212 = vmatprep.mubr.msk.bf16.mxu1 %vm197_vm0, %v2310_v9 }
  0x14   :  { %14 = vsyncpa [#allocation3], 0  ;;  %v2301_v10 = vld [vmem:[%s3398_s1 + $0x18] sm:$0xff]   ;;  %v2302_v12 = vld [vmem:[%s3398_s1 + $0x20] sm:$0xff]   ;;  %v2412_v20 = vmov 1966171168   ;;  %v413_v22 = vlaneseq }
  0x15   :  { %v2311_v11 = vld [vmem:[%s3398_s1 + $0x78] sm:$0xff]   ;;  %v2303_v13 = vld [vmem:[%s3398_s1 + $0x28] sm:$0xff]   ;;  %v2304_v14 = vld [vmem:[%s3398_s1 + $0x30] sm:$0xff]   ;;  %v411_v21 = vunpack.c.l.s4 %v2412_v20  ;;  %vm619_vm1 = vcmask 261120   ;;  %vm759_vm2 = vcmask 130112   ;;  %vm896_vm3 = vcmask 1041409  }
  0x16   :  { %v2305_v15 = vld [vmem:[%s3398_s1 + $0x38] sm:$0xff]   ;;  %v2306_v16 = vld [vmem:[%s3398_s1 + $0x40] sm:$0xff]   ;;  %v2307_v17 = vld [vmem:[%s3398_s1 + $0x48] sm:$0xff]   ;;  %v2542_v24 = vshrl.u32 %v413_v22, 7  ;;  %vm898_vm4 = vcmask 1042434   ;;  %vm900_vm5 = vcmask 1043459  }
  0x17   :  { %v2308_v18 = vld [vmem:[%s3398_s1 + $0x50] sm:$0xff]   ;;  %v2309_v19 = vld [vmem:[%s3398_s1 + $0x58] sm:$0xff]   ;;  %v412_v23 = vunpack.c.0.s8 %v411_v21  ;;  %v2547_v25 = vld [vmem:[%s3397_s0 + $0x8] sm:$0xff]  ;;  %vm902_vm6 = vcmask 1044484   ;;  %vm904_vm7 = vcmask 1045509   ;;  %vm906_vm8 = vcmask 1046534  }
  0x18   :  { %v458_v27 = vcombine.high %v2547_v25, %v2547_v25  ;;  %v34_v28 = vld [vmem:[%s3397_s0] sm:$0xff]  ;;  %v2563_v34 = vsub.s32 0, %v2542_v24  ;;  %vm908_vm9 = vcmask 1047559   ;;  %vm919_vm10 = vcmask 130048   ;;  %vm2266_vm11 = vmpackc.low %vm619_vm1, %vm619_vm1 }
  0x19   :  { %v2550_v26 = vsub.s32 %v412_v23, %v2542_v24  ;;  %v2572_v37 = vld [vmem:[%s3401_s4] ss:$0 sm:$0xff]  ;;  %v409_v59 = vcombine.high %v34_v28, %v34_v28  ;;  %vm2074_vm12 = vcmask 126976  }
  0x1a   :  { %2189 = vmatmul.mubr.msk.bf16.gmra.mrb[4].mxu0 %vm197_vm0, %v2301_v10  ;;  %2213 = vmatmul.mubr.msk.bf16.gmra.mrb[4].mxu1 %vm197_vm0, %v2311_v11 }
  0x1b   :  { %2192 = vmatprep.mubr.msk.bf16.mxu0 %vm197_vm0, %v2302_v12  ;;  %v472_v29 = vrot.slane %v458_v27, %v2550_v26  ;;  %v416_v30 = vrot.slane %v34_v28, %v2550_v26  ;;  %v423_v4 = vrot.slane %v409_v59, %v2550_v26  ;;  %v465_v59 = vrot.slane %v2547_v25, %v2550_v26 }
  0x1d   :  { %v474_v31 = vcombine.high %v472_v29, %v472_v29  ;;  %v424_v32 = vcombine.high %v416_v30, %v416_v30  ;;  %v2567_v36 = vrot.slane %v416_v30, %v2550_v26  ;;  %v2578_v42 = vrot.slane %v472_v29, %v2550_v26 }
  0x1e   :  { %v425_v20 = vcombine.high %v423_v4, %v423_v4 }
  0x1f   :  { %v2560_v33 = vrot.slane %v474_v31, %v2550_v26  ;;  %v446_v35 = vrot.slane %v424_v32, %v2550_v26  ;;  %v510_v47 = vrot.slane %v2567_v36, %v2563_v34  ;;  %v558_v58 = vrot.slane %v2578_v42, %v2563_v34 }
  0x21   :  { %v562_v38 = vrot.slane %v2560_v33, %v2563_v34  ;;  %v514_v39 = vrot.slane %v446_v35, %v2563_v34  ;;  %v456_v3 = vcombine.high %v446_v35, %v446_v35  ;;  %v453_v35 = vrot.slane %v425_v20, %v2550_v26 }
  0x22   :  { %2193 = vmatmul.mubr.msk.bf16.gmra.mrb[8].mxu0 %vm197_vm0, %v2303_v13 }
  0x23   :  { %2196 = vmatprep.mubr.msk.bf16.mxu0 %vm197_vm0, %v2304_v14 }
  0x2a   :  { %2197 = vmatmul.mubr.msk.bf16.gmra.mrb[12].mxu0 %vm197_vm0, %v2305_v15  ;;  %v454_v15 = vcombine.high %v2567_v36, %v2567_v36 }
  0x2b   :  { %2200 = vmatprep.mubr.msk.bf16.mxu0 %vm197_vm0, %v2306_v16 }
  0x2c   :  { %v518_v32 = vrot.slane %v454_v15, %v2563_v34 }
  0x32   :  { %2201 = vmatmul.mubr.msk.bf16.gmra.mrb[16].mxu0 %vm197_vm0, %v2307_v17 }
  0x33   :  { %2204 = vmatprep.mubr.msk.bf16.mxu0 %vm197_vm0, %v2308_v18 }
  0x3a   :  { %2205 = vmatmul.mubr.msk.bf16.gmra.mrb[20].mxu0 %vm197_vm0, %v2309_v19  ;;  %v522_v19 = vrot.slane %v456_v3, %v2563_v34 }
  0xe5   :  { %v2186_v40 = vpop.f32.mrb[0].mxu0  ;;  %v2210_v41 = vpop.f32.mrb[0].mxu1 }
  0xe6   :  { %v2581_v43 = vadd.f32 %v2186_v40, %v2572_v37  ;;  %v2584_v44 = vadd.f32 %v2210_v41, %v2572_v37  ;;  %v280_v45 = vpop.f32.mrb[1].mxu0  ;;  %v376_v46 = vpop.f32.mrb[1].mxu1 }
  0xe7   :  { %v2589_v48 = vadd.f32 %v2572_v37, %v280_v45  ;;  %v2187_v49 = vpop.f32.mrb[2].mxu0  ;;  %v2211_v50 = vpop.f32.mrb[2].mxu1  ;;  %v2597_v56 = vadd.f32 %v2572_v37, %v376_v46 }
  0xe8   :  { %3431 = vst [vmem:[#allocation5_spill] sm:$0xff] %v2584_v44  ;;  %v2592_v51 = vadd.f32 %v2187_v49, %v2572_v37  ;;  %v283_v52 = vpop.f32.mrb[3].mxu0  ;;  %v379_v53 = vpop.f32.mrb[3].mxu1  ;;  %v613_v54 = vmul.f32 %v562_v38, %v2584_v44  ;;  %v589_v55 = vmul.f32 %v514_v39, %v2581_v43  ;;  %v2600_v57 = vadd.f32 %v2211_v50, %v2572_v37 }
  0xe9   :  { %3432 = vst [vmem:[#allocation6_spill] sm:$0xff] %v2597_v56  ;;  %v587_v62 = vmul.f32 %v510_v47, %v2589_v48  ;;  %v2609_v0 = vadd.f32 %v2572_v37, %v283_v52  ;;  %v611_v2 = vmul.f32 %v558_v58, %v2597_v56  ;;  %v2616_v6 = vadd.f32 %v2572_v37, %v379_v53 }
  0xea   :  { %3433 = vst [vmem:[#allocation7_spill] sm:$0xff] %v2600_v57  ;;  %v698_v60 = vsel %vm619_vm1, %v613_v54, 0.0  ;;  %v626_v61 = vsel %vm619_vm1, %v589_v55, 0.0  ;;  %v590_v63 = vmul.f32 %v514_v39, %v2592_v51  ;;  %v614_v10 = vmul.f32 %v562_v38, %v2600_v57 }
  0xeb   :  { %699 = vadd.xlane.f32.xlu0 %v698_v60  ;;  %627 = vadd.xlane.f32.xlu1 %v626_v61  ;;  %3434 = vst [vmem:[#allocation8_spill] sm:$0xff] %v2616_v6  ;;  %v620_v7 = vsel %vm619_vm1, %v587_v62, 0.0  ;;  %v692_v18 = vsel %vm619_vm1, %v611_v2, 0.0  ;;  %v588_v27 = vmul.f32 %v510_v47, %v2609_v0  ;;  %v612_v28 = vmul.f32 %v558_v58, %v2616_v6 }
  0xec   :  { %v629_v8 = vsel %vm619_vm1, %v590_v63, 0.0  ;;  %v701_v23 = vsel %vm619_vm1, %v614_v10, 0.0  ;;  %v530_v50 = vrot.slane %v453_v35, %v2563_v34  ;;  %v439_v52 = vrot.slane %v423_v4, %v2550_v26 }
  0xed   :  { %v2190_v1 = vpop.f32.mrb[4].mxu0  ;;  %v2613_v5 = vpop.f32.mrb[4].mxu1  ;;  %v623_v38 = vsel %vm619_vm1, %v588_v27, 0.0  ;;  %v695_v39 = vsel %vm619_vm1, %v612_v28, 0.0  ;;  %v473_v10 = vcombine.high %v465_v59, %v465_v59 }
  0xee   :  { %v296_v9 = vpop.f32.mrb[5].mxu0  ;;  %v2621_v11 = vpop.f32.mrb[5].mxu1  ;;  %v2630_v17 = vadd.f32 %v2190_v1, %v2572_v37  ;;  %v526_v63 = vrot.slane %v439_v52, %v2563_v34  ;;  %v457_v1 = vcombine.high %v453_v35, %v453_v35 }
  0xef   :  { %621 = vadd.xlane.f32.xlu0 %v620_v7  ;;  %630 = vadd.xlane.f32.xlu1 %v629_v8  ;;  %v2191_v12 = vpop.f32.mrb[6].mxu0  ;;  %v2623_v13 = vpop.f32.mrb[6].mxu1  ;;  %v2641_v29 = vadd.f32 %v2572_v37, %v296_v9  ;;  %v495_v28 = vrot.slane %v473_v10, %v2550_v26 }
  0xf0   :  { %v299_v14 = vpop.f32.mrb[7].mxu0  ;;  %v2627_v16 = vpop.f32.mrb[7].mxu1  ;;  %v2635_v21 = vadd.f32 %v2191_v12, %v2572_v37  ;;  %v593_v31 = vmul.f32 %v522_v19, %v2630_v17  ;;  %v538_v15 = vrot.slane %v457_v1, %v2563_v34 }
  0xf1   :  { %v2647_v36 = vadd.f32 %v2572_v37, %v299_v14  ;;  %v591_v49 = vmul.f32 %v518_v32, %v2641_v29 }
  0xf2   :  { %v594_v41 = vmul.f32 %v522_v19, %v2635_v21  ;;  %v638_v47 = vsel %vm619_vm1, %v593_v31, 0.0 }
  0xf3   :  { %693 = vadd.xlane.f32.xlu0 %v692_v18  ;;  %702 = vadd.xlane.f32.xlu1 %v701_v23  ;;  %v592_v58 = vmul.f32 %v518_v32, %v2647_v36  ;;  %v632_v3 = vsel %vm619_vm1, %v591_v49, 0.0  ;;  %v455_v18 = vcombine.high %v439_v52, %v439_v52 }
  0xf4   :  { %v641_v55 = vsel %vm619_vm1, %v594_v41, 0.0 }
  0xf5   :  { %v2194_v30 = vpop.f32.mrb[8].mxu0  ;;  %v635_v2 = vsel %vm619_vm1, %v592_v58, 0.0  ;;  %v534_v35 = vrot.slane %v455_v18, %v2563_v34  ;;  %v505_v58 = vcombine.high %v495_v28, %v495_v28 }
  0xf6   :  { %v312_v40 = vpop.f32.mrb[9].mxu0  ;;  %v2657_v53 = vadd.f32 %v2194_v30, %v2572_v37 }
  0xf7   :  { %624 = vadd.xlane.f32.xlu0 %v623_v38  ;;  %696 = vadd.xlane.f32.xlu1 %v695_v39  ;;  %v2195_v45 = vpop.f32.mrb[10].mxu0  ;;  %v2667_v60 = vadd.f32 %v2572_v37, %v312_v40 }
  0xf8   :  { %v315_v46 = vpop.f32.mrb[11].mxu0  ;;  %3435 = vst [vmem:[#allocation9_spill] sm:$0xff] %v2657_v53  ;;  %v2660_v54 = vadd.f32 %v2195_v45, %v2572_v37  ;;  %v597_v8 = vmul.f32 %v530_v50, %v2657_v53 }
  0xf9   :  { %v2670_v61 = vadd.f32 %v2572_v37, %v315_v46  ;;  %v595_v14 = vmul.f32 %v526_v63, %v2667_v60 }
  0xfa   :  { %v598_v7 = vmul.f32 %v530_v50, %v2660_v54  ;;  %v650_v27 = vsel %vm619_vm1, %v597_v8, 0.0 }
  0xfb   :  { %642 = vadd.xlane.f32.xlu1 %v641_v55  ;;  %639 = vadd.xlane.f32.xlu0 %v638_v47  ;;  %v596_v12 = vmul.f32 %v526_v63, %v2670_v61  ;;  %v644_v31 = vsel %vm619_vm1, %v595_v14, 0.0  ;;  %v481_v47 = vrot.slane %v465_v59, %v2550_v26  ;;  %v546_v55 = vrot.slane %v495_v28, %v2563_v34 }
  0xfc   :  { %v653_v23 = vsel %vm619_vm1, %v598_v7, 0.0 }
  0xfd   :  { %v2198_v62 = vpop.f32.mrb[12].mxu0  ;;  %v647_v30 = vsel %vm619_vm1, %v596_v12, 0.0  ;;  %v554_v12 = vrot.slane %v505_v58, %v2563_v34  ;;  %v2750_v58 = vadd.f32 %v2572_v37, %v2621_v11  ;;  %v2768_v11 = vadd.f32 %v2623_v13, %v2572_v37 }
  0xfe   :  { %v328_v4 = vpop.f32.mrb[13].mxu0  ;;  %v2681_v19 = vadd.f32 %v2198_v62, %v2572_v37 }
  0xff   :  { %636 = vadd.xlane.f32.xlu1 %v635_v2  ;;  %633 = vadd.xlane.f32.xlu0 %v632_v3  ;;  %v2199_v25 = vpop.f32.mrb[14].mxu0  ;;  %v2693_v38 = vadd.f32 %v2572_v37, %v328_v4  ;;  %v542_v3 = vrot.slane %v481_v47, %v2563_v34  ;;  %3448 = vst [vmem:[#allocation22_spill] sm:$0xff] %v2750_v58  ;;  %3451 = vst [vmem:[#allocation25_spill] sm:$0xff] %v2768_v11 }
 0x100   :  { %v331_v9 = vpop.f32.mrb[15].mxu0  ;;  %3436 = vst [vmem:[#allocation10_spill] sm:$0xff] %v2681_v19  ;;  %v2684_v20 = vadd.f32 %v2199_v25, %v2572_v37  ;;  %v601_v41 = vmul.f32 %v538_v15, %v2681_v19 }
 0x101   :  { %3438 = vst [vmem:[#allocation12_spill] sm:$0xff] %v2693_v38  ;;  %v2696_v39 = vadd.f32 %v2572_v37, %v331_v9  ;;  %v599_v2 = vmul.f32 %v534_v35, %v2693_v38 }
 0x102   :  { %3437 = vst [vmem:[#allocation11_spill] sm:$0xff] %v2684_v20  ;;  %v602_v40 = vmul.f32 %v538_v15, %v2684_v20  ;;  %v662_v63 = vsel %vm619_vm1, %v601_v41, 0.0 }
 0x103   :  { %654 = vadd.xlane.f32.xlu1 %v653_v23  ;;  %651 = vadd.xlane.f32.xlu0 %v650_v27  ;;  %3439 = vst [vmem:[#allocation13_spill] sm:$0xff] %v2696_v39  ;;  %v600_v1 = vmul.f32 %v534_v35, %v2696_v39  ;;  %v656_v9 = vsel %vm619_vm1, %v599_v2, 0.0  ;;  %v503_v23 = vcombine.high %v481_v47, %v481_v47 }
 0x104   :  { %v665_v62 = vsel %vm619_vm1, %v602_v40, 0.0  ;;  %v504_v35 = vcombine.high %v2578_v42, %v2578_v42 }
 0x105   :  { %v2202_v32 = vpop.f32.mrb[16].mxu0  ;;  %v659_v25 = vsel %vm619_vm1, %v600_v1, 0.0 }
 0x106   :  { %v344_v45 = vpop.f32.mrb[17].mxu0  ;;  %v2702_v49 = vadd.f32 %v2202_v32, %v2572_v37  ;;  %v566_v42 = vrot.slane %v504_v35, %v2563_v34 }
 0x107   :  { %648 = vadd.xlane.f32.xlu1 %v647_v30  ;;  %645 = vadd.xlane.f32.xlu0 %v644_v31  ;;  %v2203_v46 = vpop.f32.mrb[18].mxu0  ;;  %v2713_v26 = vadd.f32 %v2572_v37, %v344_v45  ;;  %v550_v45 = vrot.slane %v503_v23, %v2563_v34 }
 0x108   :  { %3440 = vst [vmem:[#allocation14_spill] sm:$0xff] %v2702_v49  ;;  %v2705_v50 = vadd.f32 %v2203_v46, %v2572_v37  ;;  %v347_v52 = vpop.f32.mrb[19].mxu0  ;;  %v605_v7 = vmul.f32 %v546_v55, %v2702_v49 }
 0x109   :  { %3442 = vst [vmem:[#allocation16_spill] sm:$0xff] %v2713_v26  ;;  %v2716_v59 = vadd.f32 %v2572_v37, %v347_v52  ;;  %v603_v18 = vmul.f32 %v542_v3, %v2713_v26 }
 0x10a   :  { %3441 = vst [vmem:[#allocation15_spill] sm:$0xff] %v2705_v50  ;;  %v606_v4 = vmul.f32 %v546_v55, %v2705_v50  ;;  %v674_v30 = vsel %vm619_vm1, %v605_v7, 0.0  ;;  %v2764_v7 = vadd.f32 %v2613_v5, %v2572_v37 }
 0x10b   :  { %666 = vadd.xlane.f32.xlu1 %v665_v62  ;;  %663 = vadd.xlane.f32.xlu0 %v662_v63  ;;  %3443 = vst [vmem:[#allocation17_spill] sm:$0xff] %v2716_v59  ;;  %v604_v15 = vmul.f32 %v542_v3, %v2716_v59  ;;  %v668_v41 = vsel %vm619_vm1, %v603_v18, 0.0  ;;  %v2754_v62 = vadd.f32 %v2572_v37, %v2627_v16 }
 0x10c   :  { %v677_v28 = vsel %vm619_vm1, %v606_v4, 0.0  ;;  %v506_v63 = vcombine.high %v2560_v33, %v2560_v33  ;;  %3450 = vst [vmem:[#allocation24_spill] sm:$0xff] %v2764_v7 }
 0x10d   :  { %v2206_v8 = vpop.f32.mrb[20].mxu0  ;;  %v671_v40 = vsel %vm619_vm1, %v604_v15, 0.0  ;;  %3449 = vst [vmem:[#allocation23_spill] sm:$0xff] %v2754_v62 }
 0x10e   :  { %v360_v10 = vpop.f32.mrb[21].mxu0  ;;  %v2727_v27 = vadd.f32 %v2206_v8, %v2572_v37  ;;  %v570_v33 = vrot.slane %v506_v63, %v2563_v34 }
 0x10f   :  { %660 = vadd.xlane.f32.xlu1 %v659_v25  ;;  %657 = vadd.xlane.f32.xlu0 %v656_v9  ;;  %v2207_v14 = vpop.f32.mrb[22].mxu0  ;;  %v2740_v46 = vadd.f32 %v2572_v37, %v360_v10  ;;  %v616_v25 = vmul.f32 %v566_v42, %v2754_v62  ;;  %v615_v9 = vmul.f32 %v566_v42, %v2750_v58 }
 0x110   :  { %3444 = vst [vmem:[#allocation18_spill] sm:$0xff] %v2727_v27  ;;  %v2732_v31 = vadd.f32 %v2207_v14, %v2572_v37  ;;  %v363_v32 = vpop.f32.mrb[23].mxu0  ;;  %v609_v55 = vmul.f32 %v554_v12, %v2727_v27 }
 0x111   :  { %3446 = vst [vmem:[#allocation20_spill] sm:$0xff] %v2740_v46  ;;  %v2743_v47 = vadd.f32 %v2572_v37, %v363_v32  ;;  %v607_v4 = vmul.f32 %v550_v45, %v2740_v46  ;;  %v707_v5 = vsel %vm619_vm1, %v616_v25, 0.0  ;;  %v704_v10 = vsel %vm619_vm1, %v615_v9, 0.0 }
 0x112   :  { %3445 = vst [vmem:[#allocation19_spill] sm:$0xff] %v2732_v31  ;;  %v610_v52 = vmul.f32 %v554_v12, %v2732_v31  ;;  %v686_v2 = vsel %vm619_vm1, %v609_v55, 0.0  ;;  %v618_v12 = vmul.f32 %v570_v33, %v2768_v11  ;;  %v617_v37 = vmul.f32 %v570_v33, %v2764_v7 }
 0x113   :  { %678 = vadd.xlane.f32.xlu1 %v677_v28  ;;  %675 = vadd.xlane.f32.xlu0 %v674_v30  ;;  %3447 = vst [vmem:[#allocation21_spill] sm:$0xff] %v2743_v47  ;;  %v608_v3 = vmul.f32 %v550_v45, %v2743_v47  ;;  %v680_v8 = vsel %vm619_vm1, %v607_v4, 0.0 }
 0x114   :  { %v689_v1 = vsel %vm619_vm1, %v610_v52, 0.0  ;;  %v713_v13 = vsel %vm619_vm1, %v618_v12, 0.0  ;;  %v710_v14 = vsel %vm619_vm1, %v617_v37, 0.0 }
 0x115   :  { %v683_v16 = vsel %vm619_vm1, %v608_v3, 0.0 }
 0x117   :  { %672 = vadd.xlane.f32.xlu1 %v671_v40  ;;  %669 = vadd.xlane.f32.xlu0 %v668_v41  ;;  %v749_v41 = vand.u32 127, %v413_v22 }
 0x119   :  { %v754_v55 = vadd.s32 4294967288, %v749_v41 }
 0x11b   :  { %690 = vadd.xlane.f32.xlu1 %v689_v1  ;;  %687 = vadd.xlane.f32.xlu0 %v686_v2  ;;  %v2807_v1 = vsub.s32 %v754_v55, %v2542_v24  ;;  %v2810_v2 = vsub.s32 %v749_v41, %v2542_v24 }
 0x11f   :  { %684 = vadd.xlane.f32.xlu1 %v683_v16  ;;  %681 = vadd.xlane.f32.xlu0 %v680_v8 }
 0x123   :  { %708 = vadd.xlane.f32.xlu1 %v707_v5  ;;  %705 = vadd.xlane.f32.xlu0 %v704_v10 }
 0x127   :  { %714 = vadd.xlane.f32.xlu1 %v713_v13  ;;  %711 = vadd.xlane.f32.xlu0 %v710_v14 }
 0x178   :  { %v2781_v15 = vpop.xlane.xlu0 %699  ;;  %v2783_v18 = vpop.xlane.xlu1 %627 }
 0x179   :  { %v764_v9 = vrot.slane %v2783_v18, %v2810_v2  ;;  %v872_v49 = vrot.slane %v2781_v15, %v2810_v2 }
 0x17c   :  { %v2785_v23 = vpop.xlane.xlu0 %621  ;;  %v2787_v28 = vpop.xlane.xlu1 %630 }
 0x17d   :  { %v753_v8 = vrot.slane %v2785_v23, %v2810_v2  ;;  %v768_v25 = vrot.slane %v2787_v28, %v2807_v1 }
 0x17f   :  { %v769_v41 = vsel %vm759_vm2, %v768_v25, %v764_v9 }
 0x180   :  { %v2789_v30 = vpop.xlane.xlu0 %693  ;;  %v2791_v32 = vpop.xlane.xlu1 %702 }
 0x181   :  { %v876_v46 = vrot.slane %v2791_v32, %v2807_v1 }
 0x184   :  { %v2793_v35 = vpop.xlane.xlu0 %624  ;;  %v2795_v40 = vpop.xlane.xlu1 %696 }
 0x185   :  { %v758_v3 = vrot.slane %v2793_v35, %v2807_v1  ;;  %v867_v27 = vrot.slane %v2795_v40, %v2807_v1 }
 0x187   :  { %v760_v5 = vsel %vm759_vm2, %v758_v3, %v753_v8 }
 0x188   :  { %v2798_v45 = vpop.xlane.xlu1 %642  ;;  %v2800_v52 = vpop.xlane.xlu0 %639  ;;  %v897_v8 = vsel %vm896_vm3, %v769_v41, %v760_v5 }
 0x189   :  { %v786_v55 = vrot.slane %v2798_v45, %v2807_v1  ;;  %v782_v3 = vrot.slane %v2800_v52, %v2810_v2 }
 0x18b   :  { %v787_v25 = vsel %vm759_vm2, %v786_v55, %v782_v3 }
 0x18c   :  { %v2802_v42 = vpop.xlane.xlu1 %636  ;;  %v2804_v63 = vpop.xlane.xlu0 %633 }
 0x18d   :  { %v777_v33 = vrot.slane %v2802_v42, %v2807_v1  ;;  %v773_v16 = vrot.slane %v2804_v63, %v2810_v2 }
 0x18f   :  { %v778_v37 = vsel %vm759_vm2, %v777_v33, %v773_v16 }
 0x190   :  { %v2814_v4 = vpop.xlane.xlu1 %654  ;;  %v2816_v22 = vpop.xlane.xlu0 %651  ;;  %v899_v11 = vsel %vm898_vm4, %v778_v37, %v897_v8 }
 0x191   :  { %v804_v9 = vrot.slane %v2814_v4, %v2807_v1  ;;  %v800_v58 = vrot.slane %v2816_v22, %v2810_v2  ;;  %v901_v5 = vsel %vm900_vm5, %v787_v25, %v899_v11 }
 0x193   :  { %v805_v11 = vsel %vm759_vm2, %v804_v9, %v800_v58 }
 0x194   :  { %v2829_v10 = vpop.xlane.xlu1 %648  ;;  %v2831_v12 = vpop.xlane.xlu0 %645 }
 0x195   :  { %v795_v13 = vrot.slane %v2829_v10, %v2807_v1  ;;  %v791_v14 = vrot.slane %v2831_v12, %v2810_v2 }
 0x197   :  { %v796_v16 = vsel %vm759_vm2, %v795_v13, %v791_v14 }
 0x198   :  { %v2845_v7 = vpop.xlane.xlu1 %666  ;;  %v2847_v33 = vpop.xlane.xlu0 %663  ;;  %v903_v14 = vsel %vm902_vm6, %v796_v16, %v901_v5 }
 0x199   :  { %v822_v37 = vrot.slane %v2845_v7, %v2807_v1  ;;  %v818_v41 = vrot.slane %v2847_v33, %v2810_v2  ;;  %v905_v62 = vsel %vm904_vm7, %v805_v11, %v903_v14 }
 0x19b   :  { %v823_v16 = vsel %vm759_vm2, %v822_v37, %v818_v41 }
 0x19c   :  { %v2860_v8 = vpop.xlane.xlu1 %660  ;;  %v2862_v13 = vpop.xlane.xlu0 %657 }
 0x19d   :  { %v813_v55 = vrot.slane %v2860_v8, %v2807_v1  ;;  %v809_v3 = vrot.slane %v2862_v13, %v2810_v2 }
 0x19f   :  { %v814_v25 = vsel %vm759_vm2, %v813_v55, %v809_v3 }
 0x1a0   :  { %v2872_v44 = vpop.xlane.xlu1 %678  ;;  %v2874_v57 = vpop.xlane.xlu0 %675  ;;  %v907_v5 = vsel %vm906_vm8, %v814_v25, %v905_v62 }
 0x1a1   :  { %v909_v56 = vsel %vm908_vm9, %v823_v16, %v907_v5  ;;  %v840_v14 = vrot.slane %v2872_v44, %v2807_v1  ;;  %v836_v55 = vrot.slane %v2874_v57, %v2810_v2 }
 0x1a2   :  { %v920_v6 = vsel %vm919_vm10, %v909_v56, -inf }
 0x1a3   :  { %921 = vmax.xlane.f32.xlu0 %v920_v6  ;;  %v841_v6 = vsel %vm759_vm2, %v840_v14, %v836_v55 }
 0x1a4   :  { %v2880_v58 = vpop.xlane.xlu1 %672  ;;  %v2882_v9 = vpop.xlane.xlu0 %669 }
 0x1a5   :  { %v831_v37 = vrot.slane %v2880_v58, %v2807_v1  ;;  %v827_v62 = vrot.slane %v2882_v9, %v2810_v2 }
 0x1a7   :  { %v832_v3 = vsel %vm759_vm2, %v831_v37, %v827_v62  ;;  %v863_v62 = vrot.slane %v2789_v30, %v2810_v2 }
 0x1a8   :  { %v2892_v41 = vpop.xlane.xlu1 %690  ;;  %v2894_v56 = vpop.xlane.xlu0 %687  ;;  %v910_v31 = vsel %vm896_vm3, %v841_v6, %v832_v3 }
 0x1a9   :  { %v858_v11 = vrot.slane %v2892_v41, %v2807_v1  ;;  %v854_v25 = vrot.slane %v2894_v56, %v2810_v2  ;;  %v868_v59 = vsel %vm759_vm2, %v867_v27, %v863_v62 }
 0x1ab   :  { %v859_v37 = vsel %vm759_vm2, %v858_v11, %v854_v25 }
 0x1ac   :  { %v2902_v16 = vpop.xlane.xlu1 %684  ;;  %v2904_v5 = vpop.xlane.xlu0 %681 }
 0x1ad   :  { %v849_v14 = vrot.slane %v2902_v16, %v2807_v1  ;;  %v845_v55 = vrot.slane %v2904_v5, %v2810_v2 }
 0x1af   :  { %v850_v47 = vsel %vm759_vm2, %v849_v14, %v845_v55  ;;  %v877_v55 = vsel %vm759_vm2, %v876_v46, %v872_v49  ;;  %v2413_v46 = vmov 0  }
 0x1b0   :  { %v911_v6 = vsel %vm898_vm4, %v850_v47, %v910_v31  ;;  %v2922_v3 = vpop.xlane.xlu1 %708  ;;  %v2924_v50 = vpop.xlane.xlu0 %705  ;;  %2291 = vset.pattern.permute.xlu1 %v2413_v46  ;;  %2290 = vset.pattern.permute.xlu0 %v2413_v46  ;;  %v3430_v46 = vsub.s32 5, %v2542_v24 }
 0x1b1   :  { %v885_v11 = vrot.slane %v2922_v3, %v2807_v1  ;;  %v881_v25 = vrot.slane %v2924_v50, %v2810_v2  ;;  %v912_v26 = vsel %vm900_vm5, %v859_v37, %v911_v6  ;;  %v934_v6 = vsub.s32 1, %v2542_v24 }
 0x1b2   :  { %v913_v14 = vsel %vm902_vm6, %v868_v59, %v912_v26 }
 0x1b3   :  { %v886_v47 = vsel %vm759_vm2, %v885_v11, %v881_v25  ;;  %v914_v27 = vsel %vm904_vm7, %v877_v55, %v913_v14  ;;  %v3427_v11 = vsub.s32 3, %v2542_v24 }
 0x1b4   :  { %v2934_v19 = vpop.xlane.xlu1 %714  ;;  %v2936_v31 = vpop.xlane.xlu0 %711  ;;  %v915_v26 = vsel %vm906_vm8, %v886_v47, %v914_v27  ;;  %v3429_v27 = vsub.s32 4, %v2542_v24 }
 0x1b5   :  { %v894_v62 = vrot.slane %v2934_v19, %v2807_v1  ;;  %v890_v20 = vrot.slane %v2936_v31, %v2810_v2 }
 0x1b7   :  { %v895_v37 = vsel %vm759_vm2, %v894_v62, %v890_v20 }
 0x1b8   :  { %v916_v49 = vsel %vm908_vm9, %v895_v37, %v915_v26  ;;  %v938_v37 = vsub.s32 2, %v2542_v24 }
 0x1b9   :  { %v923_v59 = vsel %vm919_vm10, %v916_v49, -inf }
 0x1ba   :  { %924 = vmax.xlane.f32.xlu1 %v923_v59 }
 0x230   :  { %v922_v25 = vpop.xlane.xlu0 %921 }
 0x231   :  { %v931_v14 = vrot.slane %v922_v25, %v2563_v34  ;;  %v935_v55 = vrot.slane %v922_v25, %v934_v6  ;;  %v943_v62 = vrot.slane %v922_v25, %v3427_v11  ;;  %v947_v38 = vrot.slane %v922_v25, %v3429_v27 }
 0x232   :  { %v954_v11 = vsub.s32 6, %v2542_v24 }
 0x233   :  { %v1008_v20 = vsub.f32 %v2785_v23, %v931_v14  ;;  %v1009_v47 = vsub.f32 %v2793_v35, %v931_v14  ;;  %v1010_v26 = vsub.f32 %v2783_v18, %v935_v55  ;;  %v1015_v23 = vsub.f32 %v2798_v45, %v943_v62 }
 0x234   :  { %v939_v35 = vrot.slane %v922_v25, %v938_v37  ;;  %v1011_v14 = vsub.f32 %v2787_v28, %v935_v55  ;;  %v951_v18 = vrot.slane %v922_v25, %v3430_v46  ;;  %v958_v45 = vsub.s32 7, %v2542_v24 }
 0x235   :  { %v1040_v49 = vmul.f32 1.442695, %v1008_v20  ;;  %v1042_v59 = vmul.f32 1.442695, %v1009_v47  ;;  %v1044_v39 = vmul.f32 1.442695, %v1010_v26  ;;  %v1017_v20 = vsub.f32 %v2829_v10, %v947_v38 }
 0x236   :  { %v1054_v47 = vmul.f32 1.442695, %v1015_v23  ;;  %v1012_v53 = vsub.f32 %v2804_v63, %v939_v35  ;;  %v1046_v27 = vmul.f32 1.442695, %v1011_v14  ;;  %v1019_v28 = vsub.f32 %v2814_v4, %v951_v18 }
 0x237   :  { %2314 = vpow2.f32 %v1040_v49  ;;  %v955_v49 = vrot.slane %v922_v25, %v954_v11  ;;  %v1058_v55 = vmul.f32 1.442695, %v1017_v20  ;;  %v1013_v26 = vsub.f32 %v2802_v42, %v939_v35 }
 0x238   :  { %2316 = vpow2.f32 %v1042_v59  ;;  %v1048_v59 = vmul.f32 1.442695, %v1012_v53  ;;  %v2975_v63 = vrot.slane %v922_v25, %v958_v45  ;;  %v1062_v23 = vmul.f32 1.442695, %v1019_v28 }
 0x239   :  { %2318 = vpow2.f32 %v1044_v39  ;;  %v1021_v39 = vsub.f32 %v2860_v8, %v955_v49  ;;  %v1014_v4 = vsub.f32 %v2800_v52, %v943_v62  ;;  %v1050_v14 = vmul.f32 1.442695, %v1013_v26 }
 0x23a   :  { %2320 = vpow2.f32 %v1054_v47  ;;  %v1023_v53 = vsub.f32 %v2845_v7, %v2975_v63 }
 0x23b   :  { %2322 = vpow2.f32 %v1046_v27  ;;  %v1066_v27 = vmul.f32 1.442695, %v1021_v39  ;;  %v1052_v35 = vmul.f32 1.442695, %v1014_v4  ;;  %v3453_v39 = vsub.s32 4, %v2542_v24 }
 0x23c   :  { %2324 = vpow2.f32 %v1058_v55  ;;  %v1070_v47 = vmul.f32 1.442695, %v1023_v53 }
 0x23d   :  { %2326 = vpow2.f32 %v1048_v59 }
 0x23e   :  { %2328 = vpow2.f32 %v1062_v23 }
 0x23f   :  { %2330 = vpow2.f32 %v1050_v14 }
 0x240   :  { %2332 = vpow2.f32 %v1066_v27  ;;  %v3454_v27 = vsub.s32 5, %v2542_v24 }
 0x241   :  { %v2315_v46 = vpop.eup %2314  ;;  %2334 = vpow2.f32 %v1052_v35 }
 0x242   :  { %v2317_v10 = vpop.eup %2316  ;;  %1106 = vperm.xlu0 %2290, %v2315_v46   ;;  %v1016_v46 = vsub.f32 %v2831_v12, %v947_v38  ;;  %2336 = vpow2.f32 %v1070_v47  ;;  %v3452_v12 = vsub.s32 3, %v2542_v24 }
 0x243   :  { %1111 = vperm.xlu1 %2291, %v2317_v10   ;;  %v2319_v42 = vpop.eup %2318  ;;  %v1020_v10 = vsub.f32 %v2862_v13, %v955_v49 }
 0x244   :  { %v2321_v8 = vpop.eup %2320  ;;  %v1056_v55 = vmul.f32 1.442695, %v1016_v46 }
 0x245   :  { %v2323_v62 = vpop.eup %2322  ;;  %v1064_v13 = vmul.f32 1.442695, %v1020_v10 }
 0x246   :  { %1141 = vperm.xlu0 %2290, %v2321_v8   ;;  %v2325_v28 = vpop.eup %2324  ;;  %2338 = vpow2.f32 %v1056_v55 }
 0x247   :  { %v2979_v20 = vpop.xlane.xlu1 %924  ;;  %1116 = vperm.xlu1 %2291, %v2319_v42   ;;  %v2327_v38 = vpop.eup %2326  ;;  %v1022_v42 = vsub.f32 %v2847_v33, %v2975_v63 }
 0x248   :  { %v2984_v25 = vrot.slane %v2979_v20, %v934_v6  ;;  %v2990_v7 = vrot.slane %v2979_v20, %v938_v37  ;;  %v1018_v6 = vsub.f32 %v2816_v22, %v951_v18  ;;  %v2329_v37 = vpop.eup %2328  ;;  %v3004_v23 = vrot.slane %v2979_v20, %v3453_v39 }
 0x249   :  { %v2331_v18 = vpop.eup %2330  ;;  %v963_v49 = vrot.slane %v2979_v20, %v2563_v34  ;;  %v3015_v8 = vrot.slane %v2979_v20, %v3454_v27  ;;  %v1068_v33 = vmul.f32 1.442695, %v1022_v42  ;;  %v991_v55 = vrot.slane %v2979_v20, %v958_v45 }
 0x24a   :  { %v1027_v52 = vsub.f32 %v2872_v44, %v2984_v25  ;;  %1151 = vperm.xlu0 %2290, %v2325_v28   ;;  %v2996_v44 = vrot.slane %v2979_v20, %v3452_v12  ;;  %v1029_v59 = vsub.f32 %v2902_v16, %v2990_v7  ;;  %v1060_v22 = vmul.f32 1.442695, %v1018_v6  ;;  %v2333_v16 = vpop.eup %2332 }
 0x24b   :  { %1121 = vperm.xlu1 %2291, %v2323_v62   ;;  %v2335_v53 = vpop.eup %2334  ;;  %v1024_v63 = vsub.f32 %v2882_v9, %v963_v49  ;;  %v1035_v62 = vsub.f32 %v2791_v32, %v3015_v8  ;;  %v1025_v28 = vsub.f32 %v2880_v58, %v963_v49 }
 0x24c   :  { %v1078_v26 = vmul.f32 1.442695, %v1027_v52  ;;  %v1031_v4 = vsub.f32 %v2892_v41, %v2996_v44  ;;  %v1082_v14 = vmul.f32 1.442695, %v1029_v59  ;;  %v1033_v41 = vsub.f32 %v2795_v40, %v3004_v23  ;;  %v2337_v35 = vpop.eup %2336 }
 0x24d   :  { %v3023_v52 = vrot.slane %v2979_v20, %v954_v11  ;;  %v1072_v6 = vmul.f32 1.442695, %v1024_v63  ;;  %v1074_v12 = vmul.f32 1.442695, %v1025_v28  ;;  %v1039_v59 = vsub.f32 %v2934_v19, %v991_v55 }
 0x24e   :  { %2340 = vpow2.f32 %v1078_v26  ;;  %1161 = vperm.xlu0 %2290, %v2329_v37   ;;  %v1086_v46 = vmul.f32 1.442695, %v1031_v4  ;;  %v1090_v40 = vmul.f32 1.442695, %v1033_v41  ;;  %v1094_v26 = vmul.f32 1.442695, %v1035_v62 }
 0x24f   :  { %1126 = vperm.xlu1 %2291, %v2327_v38   ;;  %2342 = vpow2.f32 %v1060_v22  ;;  %v1037_v11 = vsub.f32 %v2922_v3, %v3023_v52  ;;  %v1026_v38 = vsub.f32 %v2874_v57, %v2984_v25  ;;  %v1028_v3 = vsub.f32 %v2904_v5, %v2990_v7 }
 0x250   :  { %2344 = vpow2.f32 %v1082_v14  ;;  %v2339_v34 = vpop.eup %2338  ;;  %v1102_v10 = vmul.f32 1.442695, %v1039_v59  ;;  %v1030_v25 = vsub.f32 %v2894_v56, %v2996_v44  ;;  %v1032_v5 = vsub.f32 %v2789_v30, %v3004_v23 }
 0x251   :  { %2346 = vpow2.f32 %v1064_v13  ;;  %v1098_v24 = vmul.f32 1.442695, %v1037_v11  ;;  %v1076_v20 = vmul.f32 1.442695, %v1026_v38  ;;  %v1080_v19 = vmul.f32 1.442695, %v1028_v3 }
 0x252   :  { %1171 = vperm.xlu0 %2290, %v2333_v16   ;;  %2348 = vpow2.f32 %v1086_v46  ;;  %v1084_v7 = vmul.f32 1.442695, %v1030_v25  ;;  %v1034_v14 = vsub.f32 %v2781_v15, %v3015_v8  ;;  %v1088_v56 = vmul.f32 1.442695, %v1032_v5 }
 0x253   :  { %1131 = vperm.xlu1 %2291, %v2331_v18   ;;  %2350 = vpow2.f32 %v1068_v33  ;;  %v1036_v42 = vsub.f32 %v2924_v50, %v3023_v52  ;;  %v1038_v13 = vsub.f32 %v2936_v31, %v991_v55 }
 0x254   :  { %2352 = vpow2.f32 %v1090_v40  ;;  %v1092_v30 = vmul.f32 1.442695, %v1034_v14 }
 0x255   :  { %2354 = vpow2.f32 %v1072_v6  ;;  %v1096_v49 = vmul.f32 1.442695, %v1036_v42  ;;  %v1100_v15 = vmul.f32 1.442695, %v1038_v13  ;;  %v3456_v42 = vld [vmem:[#allocation13_spill] sm:$0xff] }
 0x256   :  { %1181 = vperm.xlu0 %2290, %v2337_v35   ;;  %2356 = vpow2.f32 %v1094_v26 }
 0x257   :  { %1136 = vperm.xlu1 %2291, %v2335_v53   ;;  %2358 = vpow2.f32 %v1074_v12 }
 0x258   :  { %v2341_v47 = vpop.eup %2340  ;;  %2360 = vpow2.f32 %v1098_v24 }
 0x259   :  { %v2343_v9 = vpop.eup %2342  ;;  %2362 = vpow2.f32 %v1076_v20 }
 0x25a   :  { %1201 = vperm.xlu0 %2290, %v2341_v47   ;;  %v2345_v32 = vpop.eup %2344  ;;  %2364 = vpow2.f32 %v1102_v10 }
 0x25b   :  { %1146 = vperm.xlu1 %2291, %v2339_v34   ;;  %v2347_v58 = vpop.eup %2346  ;;  %2366 = vpow2.f32 %v1080_v19 }
 0x25c   :  { %v2349_v45 = vpop.eup %2348  ;;  %2368 = vpow2.f32 %v1084_v7 }
 0x25d   :  { %v2351_v37 = vpop.eup %2350  ;;  %2370 = vpow2.f32 %v1088_v56 }
 0x25e   :  { %1211 = vperm.xlu0 %2290, %v2345_v32   ;;  %v2353_v57 = vpop.eup %2352  ;;  %2372 = vpow2.f32 %v1092_v30 }
 0x25f   :  { %1156 = vperm.xlu1 %2291, %v2343_v9   ;;  %v2355_v22 = vpop.eup %2354  ;;  %2374 = vpow2.f32 %v1096_v49 }
 0x260   :  { %v2357_v18 = vpop.eup %2356  ;;  %2376 = vpow2.f32 %v1100_v15 }
 0x261   :  { %v2359_v39 = vpop.eup %2358 }
 0x262   :  { %1221 = vperm.xlu0 %2290, %v2349_v45   ;;  %v2361_v4 = vpop.eup %2360 }
 0x263   :  { %1166 = vperm.xlu1 %2291, %v2347_v58   ;;  %v2363_v44 = vpop.eup %2362 }
 0x264   :  { %v2365_v16 = vpop.eup %2364 }
 0x265   :  { %v2367_v23 = vpop.eup %2366 }
 0x266   :  { %1231 = vperm.xlu0 %2290, %v2353_v57   ;;  %v2369_v53 = vpop.eup %2368 }
 0x267   :  { %1176 = vperm.xlu1 %2291, %v2351_v37   ;;  %v2371_v27 = vpop.eup %2370 }
 0x268   :  { %v2373_v8 = vpop.eup %2372 }
 0x269   :  { %v2375_v41 = vpop.eup %2374 }
 0x26a   :  { %1241 = vperm.xlu0 %2290, %v2357_v18   ;;  %v2377_v50 = vpop.eup %2376 }
 0x26b   :  { %1186 = vperm.xlu1 %2291, %v2355_v22  }
 0x26e   :  { %1251 = vperm.xlu0 %2290, %v2361_v4   ;;  %v3455_v4 = vld [vmem:[#allocation9_spill] sm:$0xff] }
 0x26f   :  { %1191 = vperm.xlu1 %2291, %v2359_v39  }
 0x272   :  { %1261 = vperm.xlu0 %2290, %v2365_v16  }
 0x273   :  { %1196 = vperm.xlu1 %2291, %v2363_v44  }
 0x277   :  { %1206 = vperm.xlu1 %2291, %v2367_v23  }
 0x27b   :  { %1216 = vperm.xlu1 %2291, %v2369_v53  }
 0x27f   :  { %1226 = vperm.xlu1 %2291, %v2371_v27  }
 0x283   :  { %1236 = vperm.xlu1 %2291, %v2373_v8  }
 0x287   :  { %1246 = vperm.xlu1 %2291, %v2375_v41  }
 0x28b   :  { %1256 = vperm.xlu1 %2291, %v2377_v50  }
 0x2c1   :  { %v1107_v46 = vpop.permute.xlu0 %1106 }
 0x2c2   :  { %v1112_v35 = vpop.permute.xlu1 %1111  ;;  %v1264_v33 = vmul.f32 %v1107_v46, %v2589_v48  ;;  %v1443_v18 = vrot.slane %v1107_v46, %v2810_v2  ;;  %v3457_v46 = vld [vmem:[#allocation12_spill] sm:$0xff] }
 0x2c3   :  { %v1265_v31 = vmul.f32 %v1112_v35, %v2609_v0  ;;  %v1447_v22 = vrot.slane %v1112_v35, %v2807_v1 }
 0x2c4   :  { %v1296_v63 = vsel %vm619_vm1, %v1264_v33, 0.0 }
 0x2c5   :  { %v1297_v34 = vsel %vm619_vm1, %v1265_v31, 0.0  ;;  %v1142_v40 = vpop.permute.xlu0 %1141  ;;  %v1448_v49 = vsel %vm759_vm2, %v1447_v22, %v1443_v18  ;;  %v3460_v22 = vld [vmem:[#allocation16_spill] sm:$0xff] }
 0x2c6   :  { %v3051_v52 = vadd.f32 %v1297_v34, %v1296_v63  ;;  %v1117_v62 = vpop.permute.xlu1 %1116  ;;  %v1271_v58 = vmul.f32 %v1142_v40, %v2635_v21  ;;  %v1474_v53 = vrot.slane %v1142_v40, %v2807_v1 }
 0x2c7   :  { %v1266_v47 = vmul.f32 %v1117_v62, %v2581_v43 }
 0x2c8   :  { %v1324_v20 = vsel %vm619_vm1, %v1271_v58, 0.0  ;;  %v3459_v58 = vld [vmem:[#allocation10_spill] sm:$0xff] }
 0x2c9   :  { %v1152_v9 = vpop.permute.xlu0 %1151  ;;  %v1305_v55 = vsel %vm619_vm1, %v1266_v47, 0.0 }
 0x2ca   :  { %v1122_v28 = vpop.permute.xlu1 %1121  ;;  %v1483_v41 = vrot.slane %v1152_v9, %v2807_v1 }
 0x2cb   :  { %v1267_v6 = vmul.f32 %v1122_v28, %v2592_v51  ;;  %v1456_v57 = vrot.slane %v1122_v28, %v2807_v1  ;;  %v3458_v28 = vld [vmem:[#allocation11_spill] sm:$0xff] }
 0x2cd   :  { %v1306_v48 = vsel %vm619_vm1, %v1267_v6, 0.0  ;;  %v1162_v32 = vpop.permute.xlu0 %1161 }
 0x2ce   :  { %v3057_v11 = vadd.f32 %v1306_v48, %v1305_v55  ;;  %v1127_v0 = vpop.permute.xlu1 %1126  ;;  %v1275_v19 = vmul.f32 %v1162_v32, %v2660_v54  ;;  %v1492_v63 = vrot.slane %v1162_v32, %v2807_v1 }
 0x2cf   :  { %v1268_v26 = vmul.f32 %v1127_v0, %v2641_v29  ;;  %v1273_v29 = vmul.f32 %v1152_v9, %v2670_v61  ;;  %v1452_v61 = vrot.slane %v1117_v62, %v2810_v2  ;;  %v1461_v54 = vrot.slane %v1127_v0, %v2810_v2 }
 0x2d0   :  { %v1342_v16 = vsel %vm619_vm1, %v1275_v19, 0.0 }
 0x2d1   :  { %v1314_v43 = vsel %vm619_vm1, %v1268_v26, 0.0  ;;  %v1172_v3 = vpop.permute.xlu0 %1171  ;;  %v1333_v25 = vsel %vm619_vm1, %v1273_v29, 0.0  ;;  %v1457_v56 = vsel %vm759_vm2, %v1456_v57, %v1452_v61 }
 0x2d2   :  { %v1132_v38 = vpop.permute.xlu1 %1131  ;;  %v1277_v30 = vmul.f32 %v1172_v3, %v3456_v42  ;;  %v1584_v31 = vsel %vm896_vm3, %v1457_v56, %v1448_v49  ;;  %v1501_v34 = vrot.slane %v1172_v3, %v2807_v1  ;;  %v3463_v42 = vld [vmem:[#allocation14_spill] sm:$0xff] }
 0x2d3   :  { %v1269_v12 = vmul.f32 %v1132_v38, %v2647_v36 }
 0x2d4   :  { %v1351_v47 = vsel %vm619_vm1, %v1277_v30, 0.0 }
 0x2d5   :  { %v1315_v51 = vsel %vm619_vm1, %v1269_v12, 0.0  ;;  %v1182_v5 = vpop.permute.xlu0 %1181 }
 0x2d6   :  { %v3064_v59 = vadd.f32 %v1315_v51, %v1314_v43  ;;  %v1137_v24 = vpop.permute.xlu1 %1136  ;;  %v1279_v6 = vmul.f32 %v1182_v5, %v3458_v28  ;;  %v1510_v0 = vrot.slane %v1182_v5, %v2807_v1  ;;  %v3461_v5 = vld [vmem:[#allocation17_spill] sm:$0xff] }
 0x2d7   :  { %v1270_v45 = vmul.f32 %v1137_v24, %v2630_v17  ;;  %v1470_v44 = vrot.slane %v1137_v24, %v2810_v2 }
 0x2d8   :  { %v1360_v3 = vsel %vm619_vm1, %v1279_v6, 0.0 }
 0x2d9   :  { %v1323_v37 = vsel %vm619_vm1, %v1270_v45, 0.0  ;;  %v1475_v62 = vsel %vm759_vm2, %v1474_v53, %v1470_v44  ;;  %v3104_v40 = vpop.permute.xlu0 %1201 }
 0x2da   :  { %v3070_v10 = vadd.f32 %v1324_v20, %v1323_v37  ;;  %v1147_v36 = vpop.permute.xlu1 %1146 }
 0x2db   :  { %v1272_v21 = vmul.f32 %v1147_v36, %v2667_v60  ;;  %v1465_v60 = vrot.slane %v1132_v38, %v2807_v1  ;;  %v1479_v23 = vrot.slane %v1147_v36, %v2810_v2 }
 0x2dd   :  { %v1332_v17 = vsel %vm619_vm1, %v1272_v21, 0.0  ;;  %v1466_v50 = vsel %vm759_vm2, %v1465_v60, %v1461_v54  ;;  %v1484_v9 = vsel %vm759_vm2, %v1483_v41, %v1479_v23  ;;  %v3124_v36 = vpop.permute.xlu0 %1211 }
 0x2de   :  { %v3080_v7 = vadd.f32 %v1333_v25, %v1332_v17  ;;  %v1157_v39 = vpop.permute.xlu1 %1156  ;;  %v1585_v48 = vsel %vm898_vm4, %v1466_v50, %v1584_v31  ;;  %v3465_v50 = vld [vmem:[#allocation20_spill] sm:$0xff] }
 0x2df   :  { %v1274_v14 = vmul.f32 %v1157_v39, %v3455_v4  ;;  %v1488_v27 = vrot.slane %v1157_v39, %v2810_v2  ;;  %v1586_v12 = vsel %vm900_vm5, %v1475_v62, %v1585_v48  ;;  %v3462_v4 = vld [vmem:[#allocation15_spill] sm:$0xff] }
 0x2e0   :  { %v1587_v45 = vsel %vm902_vm6, %v1484_v9, %v1586_v12  ;;  %v3469_v12 = vld [vmem:[#allocation6_spill] sm:$0xff] }
 0x2e1   :  { %v1341_v13 = vsel %vm619_vm1, %v1274_v14, 0.0  ;;  %v1493_v26 = vsel %vm759_vm2, %v1492_v63, %v1488_v27  ;;  %v1222_v60 = vpop.permute.xlu0 %1221  ;;  %v1283_v14 = vmul.f32 %v3104_v40, %v3462_v4 }
 0x2e2   :  { %v3093_v15 = vadd.f32 %v1342_v16, %v1341_v13  ;;  %v1167_v8 = vpop.permute.xlu1 %1166  ;;  %v1588_v37 = vsel %vm904_vm7, %v1493_v26, %v1587_v45  ;;  %v3464_v13 = vld [vmem:[#allocation21_spill] sm:$0xff] }
 0x2e3   :  { %v1276_v35 = vmul.f32 %v1167_v8, %v3457_v46  ;;  %v1497_v33 = vrot.slane %v1167_v8, %v2810_v2  ;;  %v1378_v23 = vsel %vm619_vm1, %v1283_v14, 0.0  ;;  %v1285_v49 = vmul.f32 %v3124_v36, %v3464_v13 }
 0x2e5   :  { %v1350_v55 = vsel %vm619_vm1, %v1276_v35, 0.0  ;;  %v1502_v24 = vsel %vm759_vm2, %v1501_v34, %v1497_v33  ;;  %v1232_v27 = vpop.permute.xlu0 %1231  ;;  %v1387_v35 = vsel %vm619_vm1, %v1285_v49, 0.0  ;;  %v3466_v33 = vld [vmem:[#allocation19_spill] sm:$0xff]  ;;  %v3473_v49 = vld [vmem:[#allocation22_spill] sm:$0xff] }
 0x2e6   :  { %v3113_v32 = vadd.f32 %v1351_v47, %v1350_v55  ;;  %v1177_v38 = vpop.permute.xlu1 %1176  ;;  %v1589_v25 = vsel %vm906_vm8, %v1502_v24, %v1588_v37  ;;  %v1287_v31 = vmul.f32 %v1222_v60, %v3466_v33  ;;  %v3467_v47 = vld [vmem:[#allocation18_spill] sm:$0xff]  ;;  %v3468_v55 = vld [vmem:[#allocation8_spill] sm:$0xff] }
 0x2e7   :  { %v1278_v43 = vmul.f32 %v1177_v38, %v3459_v58  ;;  %v1506_v51 = vrot.slane %v1177_v38, %v2810_v2  ;;  %v1289_v48 = vmul.f32 %v1232_v27, %v3468_v55 }
 0x2e8   :  { %v1396_v9 = vsel %vm619_vm1, %v1287_v31, 0.0 }
 0x2e9   :  { %v1359_v20 = vsel %vm619_vm1, %v1278_v43, 0.0  ;;  %v1511_v29 = vsel %vm759_vm2, %v1510_v0, %v1506_v51  ;;  %v1242_v6 = vpop.permute.xlu0 %1241  ;;  %v1405_v43 = vsel %vm619_vm1, %v1289_v48, 0.0  ;;  %v3470_v51 = vld [vmem:[#allocation7_spill] sm:$0xff] }
 0x2ea   :  { %v3126_v21 = vadd.f32 %v1360_v3, %v1359_v20  ;;  %v3128_v57 = vpop.permute.xlu1 %1186  ;;  %v1590_v19 = vsel %vm908_vm9, %v1511_v29, %v1589_v25  ;;  %v1291_v24 = vmul.f32 %v1242_v6, %v3470_v51  ;;  %v1528_v25 = vrot.slane %v3104_v40, %v2807_v1 }
 0x2eb   :  { %v1600_v17 = vsel %vm919_vm10, %v1590_v19, 0.0  ;;  %v1280_v18 = vmul.f32 %v3128_v57, %v3460_v22 }
 0x2ec   :  { %1601 = vadd.xlane.f32.xlu1 %v1600_v17  ;;  %v3471_v17 = vld [vmem:[#allocation5_spill] sm:$0xff]  ;;  %v1414_v14 = vsel %vm619_vm1, %v1291_v24, 0.0 }
 0x2ed   :  { %v1368_v56 = vsel %vm619_vm1, %v1280_v18, 0.0  ;;  %v1252_v3 = vpop.permute.xlu0 %1251  ;;  %v1537_v18 = vrot.slane %v3124_v36, %v2807_v1 }
 0x2ee   :  { %v1192_v61 = vpop.permute.xlu1 %1191 }
 0x2ef   :  { %v1281_v39 = vmul.f32 %v1192_v61, %v3461_v5  ;;  %v1546_v5 = vrot.slane %v1222_v60, %v2807_v1 }
 0x2f1   :  { %v1369_v54 = vsel %vm619_vm1, %v1281_v39, 0.0  ;;  %v1519_v39 = vrot.slane %v1192_v61, %v2807_v1 }
 0x2f2   :  { %v3140_v44 = vadd.f32 %v1369_v54, %v1368_v56  ;;  %v1197_v16 = vpop.permute.xlu1 %1196  ;;  %v3472_v56 = vld [vmem:[#allocation23_spill] sm:$0xff] }
 0x2f3   :  { %v1282_v30 = vmul.f32 %v1197_v16, %v3463_v42  ;;  %v1524_v20 = vrot.slane %v1197_v16, %v2810_v2  ;;  %v1293_v54 = vmul.f32 %v1252_v3, %v3472_v56  ;;  %v1515_v42 = vrot.slane %v3128_v57, %v2810_v2 }
 0x2f4   :  { %v1573_v57 = vrot.slane %v1252_v3, %v2807_v1  ;;  %v1660_v3 = vld [vmem:[%s3403_s6] sm:$0xff]  ;;  %v1326_v56 = vrot.slane %v3070_v10, 4 }
 0x2f5   :  { %v1377_v53 = vsel %vm619_vm1, %v1282_v30, 0.0  ;;  %v1529_v30 = vsel %vm759_vm2, %v1528_v25, %v1524_v20  ;;  %v1423_v31 = vsel %vm619_vm1, %v1293_v54, 0.0  ;;  %v1661_v20 = vld [vmem:[%s3403_s6 + $0x8] sm:$0xff]  ;;  %v1335_v54 = vrot.slane %v3080_v7, 4 }
 0x2f6   :  { %v3147_v8 = vadd.f32 %v1378_v23, %v1377_v53  ;;  %v1207_v41 = vpop.permute.xlu1 %1206  ;;  %v1555_v23 = vrot.slane %v1232_v27, %v2807_v1  ;;  %v2249_v25 = vpack.c.bf16 %v1661_v20, %v1660_v3 }
 0x2f7   :  { %v1284_v46 = vmul.f32 %v1207_v41, %v3465_v50  ;;  %v1533_v19 = vrot.slane %v1207_v41, %v2810_v2  ;;  %v1564_v50 = vrot.slane %v1242_v6, %v2807_v1 }
 0x2f8   :  { %2250 = vmatprep.subr.bf16.mxu1 %v2249_v25 }
 0x2f9   :  { %v1386_v63 = vsel %vm619_vm1, %v1284_v46, 0.0  ;;  %v1538_v13 = vsel %vm759_vm2, %v1537_v18, %v1533_v19  ;;  %v1520_v46 = vsel %vm759_vm2, %v1519_v39, %v1515_v42  ;;  %v1663_v19 = vld [vmem:[%s3403_s6 + $0x18] sm:$0xff]  ;;  %v1657_v18 = vld [vmem:[%s3402_s5 + $0x8] sm:$0xff]  ;;  %2252 = vmatpush3.bf16.msra.mxu1 %v2249_v25  ;;  %v1299_v39 = vrot.slane %v3051_v52, 4 }
 0x2fa   :  { %v3153_v34 = vadd.f32 %v1387_v35, %v1386_v63  ;;  %v1217_v62 = vpop.permute.xlu1 %1216  ;;  %v3194_v35 = vpop.permute.xlu0 %1261  ;;  %v1591_v27 = vsel %vm896_vm3, %v1529_v30, %v1520_v46 }
 0x2fb   :  { %v1286_v28 = vmul.f32 %v1217_v62, %v3467_v47  ;;  %v1542_v4 = vrot.slane %v1217_v62, %v2810_v2  ;;  %v1592_v47 = vsel %vm898_vm4, %v1538_v13, %v1591_v27  ;;  %v1582_v55 = vrot.slane %v3194_v35, %v2807_v1 }
 0x2fc   :  { %v1336_v13 = vadd.f32 %v1335_v54, %v3080_v7 }
 0x2fd   :  { %v1395_v0 = vsel %vm619_vm1, %v1286_v28, 0.0  ;;  %v1547_v33 = vsel %vm759_vm2, %v1546_v5, %v1542_v4  ;;  %v1308_v4 = vrot.slane %v3057_v11, 4 }
 0x2fe   :  { %v3159_v26 = vadd.f32 %v1396_v9, %v1395_v0  ;;  %v1227_v38 = vpop.permute.xlu1 %1226  ;;  %v1593_v48 = vsel %vm900_vm5, %v1547_v33, %v1592_v47 }
 0x2ff   :  { %v1288_v58 = vmul.f32 %v1227_v38, %v3469_v12  ;;  %v1551_v16 = vrot.slane %v1227_v38, %v2810_v2  ;;  %v1309_v42 = vadd.f32 %v1308_v4, %v3057_v11 }
 0x301   :  { %v1404_v45 = vsel %vm619_vm1, %v1288_v58, 0.0  ;;  %v1556_v63 = vsel %vm759_vm2, %v1555_v23, %v1551_v16  ;;  %v1344_v16 = vrot.slane %v3093_v15, 4  ;;  %v1362_v23 = vrot.slane %v3126_v21, 4 }
 0x302   :  { %v3166_v29 = vadd.f32 %v1405_v43, %v1404_v45  ;;  %v1237_v37 = vpop.permute.xlu1 %1236  ;;  %v1594_v12 = vsel %vm902_vm6, %v1556_v63, %v1593_v48 }
 0x303   :  { %v1290_v22 = vmul.f32 %v1237_v37, %v3471_v17  ;;  %v1560_v60 = vrot.slane %v1237_v37, %v2810_v2  ;;  %v1662_v37 = vld [vmem:[%s3403_s6 + $0x10] sm:$0xff]  ;;  %v1363_v11 = vadd.f32 %v1362_v23, %v3126_v21 }
 0x304   :  { %v2253_v17 = vpack.c.bf16 %v1663_v19, %v1662_v37 }
 0x305   :  { %v1413_v40 = vsel %vm619_vm1, %v1290_v22, 0.0  ;;  %v1565_v28 = vsel %vm759_vm2, %v1564_v50, %v1560_v60  ;;  %v1656_v22 = vld [vmem:[%s3402_s5] sm:$0xff]  ;;  %v1327_v60 = vadd.f32 %v1326_v56, %v3070_v10  ;;  %v1364_v7 = vrot.slane %v1363_v11, 2 }
 0x306   :  { %v3184_v36 = vadd.f32 %v1414_v14, %v1413_v40  ;;  %v1247_v61 = vpop.permute.xlu1 %1246  ;;  %v1595_v43 = vsel %vm904_vm7, %v1565_v28, %v1594_v12  ;;  %2254 = vmatprep.subr.bf16.mxu1 %v2253_v17  ;;  %v3237_v5 = vpack.c.bf16 %v1657_v18, %v1656_v22  ;;  %v1317_v14 = vrot.slane %v3064_v59, 4 }
 0x307   :  { %v1292_v53 = vmul.f32 %v1247_v61, %v3473_v49  ;;  %v1569_v41 = vrot.slane %v1247_v61, %v2810_v2  ;;  %2256 = vmatpush3.bf16.msra.mxu1 %v2253_v17  ;;  %v1300_v40 = vadd.f32 %v1299_v39, %v3051_v52  ;;  %v1353_v61 = vrot.slane %v3113_v32, 4 }
 0x308   :  { %2258 = vmatprep.subr.bf16.mxu1 %v3237_v5  ;;  %v1318_v30 = vadd.f32 %v1317_v14, %v3064_v59  ;;  %v1345_v49 = vadd.f32 %v1344_v16, %v3093_v15  ;;  %v1328_v46 = vrot.slane %v1327_v60, 2  ;;  %v1337_v59 = vrot.slane %v1336_v13, 2 }
 0x309   :  { %v1422_v62 = vsel %vm619_vm1, %v1292_v53, 0.0  ;;  %v1574_v38 = vsel %vm759_vm2, %v1573_v57, %v1569_v41  ;;  %v1301_v53 = vrot.slane %v1300_v40, 2  ;;  %v1310_v41 = vrot.slane %v1309_v42, 2 }
 0x30a   :  { %v3203_v6 = vadd.f32 %v1423_v31, %v1422_v62  ;;  %v3205_v9 = vpop.permute.xlu1 %1256  ;;  %v1596_v51 = vsel %vm906_vm8, %v1574_v38, %v1595_v43  ;;  %v1319_v50 = vrot.slane %v1318_v30, 2  ;;  %v1354_v52 = vadd.f32 %v1353_v61, %v3113_v32 }
 0x30b   :  { %v1578_v0 = vrot.slane %v3205_v9, %v2810_v2  ;;  %v1346_v33 = vrot.slane %v1345_v49, 2  ;;  %v1302_v10 = vadd.f32 %v1301_v53, %v1300_v40  ;;  %v1311_v31 = vadd.f32 %v1310_v41, %v1309_v42 }
 0x30c   :  { %v1320_v27 = vadd.f32 %v1319_v50, %v1318_v30  ;;  %v1329_v63 = vadd.f32 %v1328_v46, %v1327_v60  ;;  %v1355_v62 = vrot.slane %v1354_v52, 2  ;;  %v1338_v47 = vadd.f32 %v1337_v59, %v1336_v13 }
 0x30d   :  { %v1583_v58 = vsel %vm759_vm2, %v1582_v55, %v1578_v0  ;;  %v1347_v15 = vadd.f32 %v1346_v33, %v1345_v49  ;;  %v1303_v28 = vrot.slane %v1302_v10, 1  ;;  %v1312_v55 = vrot.slane %v1311_v31, 1 }
 0x30e   :  { %v1597_v24 = vsel %vm908_vm9, %v1583_v58, %v1596_v51  ;;  %v1321_v48 = vrot.slane %v1320_v27, 1  ;;  %v1330_v0 = vrot.slane %v1329_v63, 1  ;;  %v1356_v38 = vadd.f32 %v1355_v62, %v1354_v52 }
 0x30f   :  { %v1603_v45 = vsel %vm919_vm10, %v1597_v24, 0.0  ;;  %v1365_v32 = vadd.f32 %v1364_v7, %v1363_v11  ;;  %v1339_v12 = vrot.slane %v1338_v47, 1  ;;  %v1348_v21 = vrot.slane %v1347_v15, 1  ;;  %v3474_v11 = vld [vmem:[#allocation24_spill] sm:$0xff] }
 0x310   :  { %1604 = vadd.xlane.f32.xlu0 %v1603_v45  ;;  %v1304_v58 = vadd.f32 %v1303_v28, %v1302_v10  ;;  %v1313_v43 = vadd.f32 %v1312_v55, %v1311_v31  ;;  %v1322_v24 = vadd.f32 %v1321_v48, %v1320_v27  ;;  %v1331_v45 = vadd.f32 %v1330_v0, %v1329_v63  ;;  %v3475_v27 = vld [vmem:[#allocation25_spill] sm:$0xff] }
 0x311   :  { %v1357_v3 = vrot.slane %v1356_v38, 1  ;;  %v1366_v20 = vrot.slane %v1365_v32, 1  ;;  %v1340_v22 = vadd.f32 %v1339_v12, %v1338_v47  ;;  %v1349_v18 = vadd.f32 %v1348_v21, %v1347_v15 }
 0x312   :  { %v1295_v63 = vmul.f32 %v3194_v35, %v3475_v27  ;;  %v1380_v55 = vrot.slane %v3147_v8, 4  ;;  %v1389_v0 = vrot.slane %v3153_v34, 4  ;;  %v1398_v35 = vrot.slane %v3159_v26, 4 }
 0x313   :  { %v1358_v40 = vadd.f32 %v1357_v3, %v1356_v38  ;;  %v1367_v42 = vadd.f32 %v1366_v20, %v1365_v32  ;;  %v1407_v32 = vrot.slane %v3166_v29, 4  ;;  %v1416_v12 = vrot.slane %v3184_v36, 4 }
 0x314   :  { %v1432_v48 = vsel %vm619_vm1, %v1295_v63, 0.0 }
 0x315   :  { %v1408_v3 = vadd.f32 %v1407_v32, %v3166_v29  ;;  %v1417_v20 = vadd.f32 %v1416_v12, %v3184_v36 }
 0x379   :  { %v1602_v57 = vpop.xlane.xlu1 %1601 }
 0x37a   :  { %2378 = vrcp.f32 %v1602_v57  ;;  %v1294_v57 = vmul.f32 %v3205_v9, %v3474_v11  ;;  %v1371_v9 = vrot.slane %v3140_v44, 4 }
 0x37c   :  { %v1431_v15 = vsel %vm619_vm1, %v1294_v57, 0.0  ;;  %v1372_v21 = vadd.f32 %v1371_v9, %v3140_v44 }
 0x37d   :  { %v1433_v38 = vadd.f32 %v1432_v48, %v1431_v15 }
 0x384   :  { %v2379_v51 = vpop.eup %2378 }
 0x385   :  { %v1610_v37 = vrot.slane %v2379_v51, 1  ;;  %v1611_v25 = vrot.slane %v2379_v51, 2  ;;  %v1612_v19 = vrot.slane %v2379_v51, 3  ;;  %v1613_v17 = vrot.slane %v2379_v51, 4 }
 0x386   :  { %v1614_v39 = vrot.slane %v2379_v51, 5  ;;  %v1615_v4 = vrot.slane %v2379_v51, 6  ;;  %v1616_v14 = vrot.slane %v2379_v51, 7  ;;  %v1640_v60 = vmul.f32 %v2379_v51, %v1304_v58 }
 0x387   :  { %v1641_v56 = vmul.f32 %v1610_v37, %v1313_v43  ;;  %v1642_v54 = vmul.f32 %v1611_v25, %v1322_v24  ;;  %v1643_v16 = vmul.f32 %v1612_v19, %v1331_v45  ;;  %v1644_v30 = vmul.f32 %v1613_v17, %v1340_v22 }
 0x388   :  { %v1645_v61 = vmul.f32 %v1614_v39, %v1349_v18  ;;  %v1646_v49 = vmul.f32 %v1615_v4, %v1358_v40  ;;  %v1647_v53 = vmul.f32 %v1616_v14, %v1367_v42  ;;  %v1381_v58 = vadd.f32 %v1380_v55, %v3147_v8 }
 0x389   :  { %v1680_v23 = vrot.slane %v1641_v56, 7  ;;  %v1682_v13 = vrot.slane %v1642_v54, 6  ;;  %v1684_v50 = vrot.slane %v1643_v16, 5  ;;  %v1686_v52 = vrot.slane %v1644_v30, 4 }
 0x38a   :  { %v1688_v33 = vrot.slane %v1645_v61, 3  ;;  %v1690_v31 = vrot.slane %v1646_v49, 2  ;;  %v1692_v7 = vrot.slane %v1647_v53, 1  ;;  %v1390_v43 = vadd.f32 %v1389_v0, %v3153_v34 }
 0x38b   :  { %v1681_v41 = vsel %vm896_vm3, %v1680_v23, %v1640_v60  ;;  %v1399_v51 = vadd.f32 %v1398_v35, %v3159_v26  ;;  %v1425_v24 = vrot.slane %v3203_v6, 4  ;;  %v1434_v45 = vrot.slane %v1433_v38, 4 }
 0x38c   :  { %v1683_v46 = vsel %vm898_vm4, %v1682_v13, %v1681_v41  ;;  %v1373_v37 = vrot.slane %v1372_v21, 2  ;;  %v1382_v25 = vrot.slane %v1381_v58, 2  ;;  %v1391_v19 = vrot.slane %v1390_v43, 2 }
 0x38d   :  { %v1685_v59 = vsel %vm900_vm5, %v1684_v50, %v1683_v46  ;;  %v1400_v17 = vrot.slane %v1399_v51, 2  ;;  %v1426_v22 = vadd.f32 %v1425_v24, %v3203_v6  ;;  %v1435_v44 = vadd.f32 %v1434_v45, %v1433_v38 }
 0x38e   :  { %v1687_v10 = vsel %vm902_vm6, %v1686_v52, %v1685_v59  ;;  %v1409_v8 = vrot.slane %v1408_v3, 2  ;;  %v1418_v39 = vrot.slane %v1417_v20, 2  ;;  %v1374_v34 = vadd.f32 %v1373_v37, %v1372_v21 }
 0x38f   :  { %v1689_v62 = vsel %vm904_vm7, %v1688_v33, %v1687_v10  ;;  %v1383_v26 = vadd.f32 %v1382_v25, %v1381_v58  ;;  %v1392_v4 = vadd.f32 %v1391_v19, %v1390_v43  ;;  %v1401_v14 = vadd.f32 %v1400_v17, %v1399_v51 }
 0x390   :  { %v1691_v47 = vsel %vm906_vm8, %v1690_v31, %v1689_v62  ;;  %v1427_v56 = vrot.slane %v1426_v22, 2  ;;  %v1436_v54 = vrot.slane %v1435_v44, 2  ;;  %v1410_v29 = vadd.f32 %v1409_v8, %v1408_v3  ;;  %v1658_v3 = vld [vmem:[%s3402_s5 + $0x10] sm:$0xff]  ;;  %v2386_v8 = vld [vmem:[%s3397_s0] sm:$0xff] }
 0x391   :  { %v1693_v28 = vsel %vm908_vm9, %v1692_v7, %v1691_v47  ;;  %v1419_v16 = vadd.f32 %v1418_v39, %v1417_v20  ;;  %v1375_v36 = vrot.slane %v1374_v34, 1  ;;  %v1384_v40 = vrot.slane %v1383_v26, 1  ;;  %v1659_v20 = vld [vmem:[%s3402_s5 + $0x18] sm:$0xff]  ;;  %v2387_v39 = vld [vmem:[%s3397_s0 + $0x8] sm:$0xff] }
 0x392   :  { %2224 = vmatprep.mubr.msk.f32.mxu1 %vm619_vm1, %v1693_v28  ;;  %v1393_v42 = vrot.slane %v1392_v4, 1  ;;  %v1402_v30 = vrot.slane %v1401_v14, 1  ;;  %v1428_v60 = vadd.f32 %v1427_v56, %v1426_v22  ;;  %v1437_v61 = vadd.f32 %v1436_v54, %v1435_v44  ;;  %v2131_v54 = vld [vmem:[%s3404_s7] ss:$0 sm:$0xff] }
 0x393   :  { %v1411_v6 = vrot.slane %v1410_v29, 1  ;;  %v1420_v23 = vrot.slane %v1419_v16, 1  ;;  %v1376_v13 = vadd.f32 %v1375_v36, %v1374_v34  ;;  %v1385_v49 = vadd.f32 %v1384_v40, %v1383_v26  ;;  %v1877_v34 = vld [vmem:[%s3405_s8] sm:$0xff] }
 0x394   :  { %v1394_v41 = vadd.f32 %v1393_v42, %v1392_v4  ;;  %v1403_v50 = vadd.f32 %v1402_v30, %v1401_v14  ;;  %v1429_v46 = vrot.slane %v1428_v60, 1  ;;  %v1438_v52 = vrot.slane %v1437_v61, 1  ;;  %v1879_v4 = vld [vmem:[%s3405_s8 + $0x10] sm:$0xff]  ;;  %v1880_v14 = vld [vmem:[%s3405_s8 + $0x18] sm:$0xff] }
 0x395   :  { %v1412_v10 = vadd.f32 %v1411_v6, %v1410_v29  ;;  %v1421_v31 = vadd.f32 %v1420_v23, %v1419_v16  ;;  %v2261_v44 = vpack.c.bf16 %v1659_v20, %v1658_v3  ;;  %v2271_v56 = vpack.c.bf16 %v1880_v14, %v1879_v4  ;;  %v39_v23 = vld [vmem:[%s3399_s2 + $0x18] sm:$0xff] }
 0x396   :  { %v1430_v28 = vadd.f32 %v1429_v46, %v1428_v60  ;;  %v1439_v9 = vadd.f32 %v1438_v52, %v1437_v61  ;;  %v37_v60 = vld [vmem:[%s3399_s2 + $0x8] sm:$0xff]  ;;  %v36_v61 = vld [vmem:[%s3399_s2] sm:$0xff] }
 0x39d   :  { %v1605_v18 = vpop.xlane.xlu0 %1604 }
 0x39e   :  { %2380 = vrcp.f32 %v1605_v18 }
 0x3a8   :  { %v2381_v53 = vpop.eup %2380 }
 0x3a9   :  { %v1617_v11 = vrot.slane %v2381_v53, 1  ;;  %v1618_v57 = vrot.slane %v2381_v53, 2  ;;  %v1619_v59 = vrot.slane %v2381_v53, 3  ;;  %v1620_v33 = vrot.slane %v2381_v53, 4 }
 0x3aa   :  { %v1621_v27 = vrot.slane %v2381_v53, 5  ;;  %v1622_v63 = vrot.slane %v2381_v53, 6  ;;  %v1623_v62 = vrot.slane %v2381_v53, 7  ;;  %v1648_v48 = vmul.f32 %v2381_v53, %v1376_v13  ;;  %v38_v53 = vld [vmem:[%s3399_s2 + $0x10] sm:$0xff] }
 0x3ab   :  { %v1649_v7 = vmul.f32 %v1617_v11, %v1385_v49  ;;  %v1650_v47 = vmul.f32 %v1618_v57, %v1394_v41  ;;  %v1651_v15 = vmul.f32 %v1619_v59, %v1403_v50  ;;  %v1652_v55 = vmul.f32 %v1620_v33, %v1412_v10  ;;  %v41_v57 = vld [vmem:[%s3399_s2 + $0x28] sm:$0xff]  ;;  %v40_v59 = vld [vmem:[%s3399_s2 + $0x20] sm:$0xff] }
 0x3ac   :  { %v1653_v0 = vmul.f32 %v1621_v27, %v1421_v31  ;;  %v1654_v32 = vmul.f32 %v1622_v63, %v1430_v28  ;;  %v1655_v12 = vmul.f32 %v1623_v62, %v1439_v9  ;;  %v43_v63 = vld [vmem:[%s3399_s2 + $0x38] sm:$0xff]  ;;  %v42_v62 = vld [vmem:[%s3399_s2 + $0x30] sm:$0xff]  ;;  %v45_v9 = vld [vmem:[%s3399_s2 + $0x48] sm:$0xff] }
 0x3ad   :  { %v1694_v35 = vrot.slane %v1649_v7, 7  ;;  %v1696_v38 = vrot.slane %v1650_v47, 6  ;;  %v1698_v58 = vrot.slane %v1651_v15, 5  ;;  %v1700_v51 = vrot.slane %v1652_v55, 4  ;;  %v44_v55 = vld [vmem:[%s3399_s2 + $0x40] sm:$0xff]  ;;  %s2414_s2 = smov [#allocation2]  }
 0x3ae   :  { %v1702_v45 = vrot.slane %v1653_v0, 3  ;;  %v1704_v25 = vrot.slane %v1654_v32, 2  ;;  %v1706_v17 = vrot.slane %v1655_v12, 1  ;;  %s2082_s27 = sshll.u32 %s2414_s2, 4  ;;  %s2083_s27 = int_to_ptr.vmem [resolvable:$true] %s2082_s27 }
 0x3af   :  { %v1695_v21 = vsel %vm896_vm3, %v1694_v35, %v1648_v48  ;;  %s2388_s1 = scalar_lea.vmem %s2083_s27, 128  ;;  %p2393_p1 = scmp.lt.s32.totalorder %s2083_s27, %s2083_s27 }
 0x3b0   :  { %v1697_v43 = vsel %vm898_vm4, %v1696_v38, %v1695_v21  ;;  %p2389_p0 = scmp.ne.s32.totalorder %s2083_s27, %s2388_s1  ;;  %p2394_p2 = scmp.lt.s32.totalorder %s2388_s1, %s2388_s1 }
 0x3b1   :  { %v1699_v24 = vsel %vm900_vm5, %v1698_v58, %v1697_v43 }
 0x3b2   :  { %v1701_v37 = vsel %vm902_vm6, %v1700_v51, %v1699_v24  ;;  %p2395_p3 = por %p2394_p2, %p2393_p1 }
 0x3b3   :  { %v1703_v19 = vsel %vm904_vm7, %v1702_v45, %v1701_v37 }
 0x3b4   :  { %v1705_v22 = vsel %vm906_vm8, %v1704_v25, %v1703_v19  ;;  %p2396_p4 = pnand %p2395_p3, %p2389_p0 }
 0x3b5   :  { %v1707_v18 = vsel %vm908_vm9, %v1706_v17, %v1705_v22 }
 0x3b6   :  { %2225 = vmatmul.mubr.msk.f32.vlgmr.msra.gmra.mrb[8].mxu1 %vm619_vm1, %v1707_v18 }
 0x3b7   :  { %2260 = vmatpush3.bf16.msra.mxu1 %v3237_v5  ;;  %2235 = vmatprep.mubr.msk.f32.mxu1 %vm619_vm1, %v2386_v8  ;;  %v1878_v5 = vld [vmem:[%s3405_s8 + $0x8] sm:$0xff] }
 0x3b8   :  { %2262 = vmatprep.subr.bf16.mxu1 %v2261_v44  ;;  %v2265_v26 = vpack.c.bf16 %v1878_v5, %v1877_v34 }
 0x3bb   :  { %2264 = vmatpush3.bf16.msra.mxu1 %v2261_v44 }
 0x3bc   :  { %2267 = vmatprep.subr.msk.bf16.mxu1 %vm2266_vm11, %v2265_v26 }
 0x3be   :  { %2236 = vmatmul.mubr.msk.f32.vlgmr.msra.gmra.mrb[8].mxu1 %vm619_vm1, %v2387_v39 }
 0x3c4   :  { %2270 = vmatpush3.bf16.xpose.msk.msra.mxu1 %vm2266_vm11, %v2265_v26 }
 0x3c5   :  { %2273 = vmatprep.subr.msk.bf16.mxu1 %vm2266_vm11, %v2271_v56 }
 0x3cc   :  { %2276 = vmatpush3.bf16.xpose.msk.msra.mxu1 %vm2266_vm11, %v2271_v56 }
 0x491   :  { %v2237_v29 = vpop.f32.mrb[8].mxu1 }
 0x492   :  { %v1874_v16 = vadd.f32 %v2237_v29, %v2131_v54  ;;  %v1857_v36 = vpop.f32.mrb[9].mxu1 }
 0x493   :  { %v1873_v40 = vadd.f32 %v2131_v54, %v1857_v36 }
 0x495   :  { %2382 = vtanh.f32 %v1873_v40 }
 0x496   :  { %2384 = vtanh.f32 %v1874_v16 }
 0x49f   :  { %v2383_v42 = vpop.eup %2382 }
 0x4a0   :  { %v2385_v30 = vpop.eup %2384  ;;  %2246 = vmatprep.mubr.msk.f32.mxu1 %vm619_vm1, %v2383_v42 }
 0x4a1   :  { %2247 = vmatmul.mubr.msk.f32.vlgmr.msra.gmra.mrb[10].mxu1 %vm619_vm1, %v2385_v30 }
 0x574   :  { %v2248_v6 = vpop.f32.mrb[10].mxu1 }
 0x575   :  { %v1965_v13 = vpop.f32.mrb[11].mxu1  ;;  %v1975_v49 = vmul.f32 %v2248_v6, %v37_v60  ;;  %v1977_v46 = vmul.f32 %v2248_v6, %v39_v23  ;;  %v1979_v10 = vmul.f32 %v2248_v6, %v41_v57  ;;  %v1981_v47 = vmul.f32 %v2248_v6, %v43_v63 }
 0x576   :  { %v1974_v41 = vmul.f32 %v1965_v13, %v36_v61  ;;  %v1976_v11 = vmul.f32 %v1965_v13, %v38_v53  ;;  %v1978_v27 = vmul.f32 %v1965_v13, %v40_v59  ;;  %v1980_v28 = vmul.f32 %v1965_v13, %v42_v62 }
 0x577   :  { %v1987_v50 = vsel %vm619_vm1, %v1975_v49, 0.0  ;;  %v1993_v33 = vsel %vm619_vm1, %v1977_v46, 0.0  ;;  %v1999_v7 = vsel %vm619_vm1, %v1979_v10, 0.0  ;;  %v2005_v48 = vsel %vm619_vm1, %v1981_v47, 0.0 }
 0x578   :  { %1988 = vadd.xlane.f32.xlu1 %v1987_v50  ;;  %v1984_v52 = vsel %vm619_vm1, %v1974_v41, 0.0  ;;  %v1990_v31 = vsel %vm619_vm1, %v1976_v11, 0.0  ;;  %v1996_v15 = vsel %vm619_vm1, %v1978_v27, 0.0  ;;  %v1983_v0 = vmul.f32 %v2248_v6, %v45_v9 }
 0x579   :  { %1985 = vadd.xlane.f32.xlu0 %v1984_v52  ;;  %v2002_v35 = vsel %vm619_vm1, %v1980_v28, 0.0  ;;  %v1982_v38 = vmul.f32 %v1965_v13, %v44_v55 }
 0x57a   :  { %v2011_v32 = vsel %vm619_vm1, %v1983_v0, 0.0 }
 0x57b   :  { %v2008_v12 = vsel %vm619_vm1, %v1982_v38, 0.0 }
 0x57c   :  { %1994 = vadd.xlane.f32.xlu1 %v1993_v33 }
 0x57d   :  { %1991 = vadd.xlane.f32.xlu0 %v1990_v31 }
 0x580   :  { %2000 = vadd.xlane.f32.xlu1 %v1999_v7 }
 0x581   :  { %1997 = vadd.xlane.f32.xlu0 %v1996_v15 }
 0x584   :  { %2006 = vadd.xlane.f32.xlu1 %v2005_v48 }
 0x585   :  { %2003 = vadd.xlane.f32.xlu0 %v2002_v35 }
 0x588   :  { %2012 = vadd.xlane.f32.xlu1 %v2011_v32 }
 0x589   :  { %2009 = vadd.xlane.f32.xlu0 %v2008_v12 }
 0x605   :  { %v1989_v21 = vpop.xlane.xlu1 %1988 }
 0x606   :  { %v1986_v58 = vpop.xlane.xlu0 %1985  ;;  %v2031_v17 = vrot.slane %v1989_v21, %v2807_v1 }
 0x607   :  { %v2027_v22 = vrot.slane %v1986_v58, %v2810_v2 }
 0x609   :  { %v1995_v43 = vpop.xlane.xlu1 %1994  ;;  %v2032_v26 = vsel %vm759_vm2, %v2031_v17, %v2027_v22 }
 0x60a   :  { %v1992_v51 = vpop.xlane.xlu0 %1991  ;;  %v2040_v3 = vrot.slane %v1995_v43, %v2807_v1 }
 0x60b   :  { %v2036_v20 = vrot.slane %v1992_v51, %v2810_v2 }
 0x60d   :  { %v2001_v24 = vpop.xlane.xlu1 %2000  ;;  %v2041_v39 = vsel %vm759_vm2, %v2040_v3, %v2036_v20 }
 0x60e   :  { %v1998_v45 = vpop.xlane.xlu0 %1997  ;;  %v2049_v37 = vrot.slane %v2001_v24, %v2807_v1  ;;  %v2069_v54 = vsel %vm896_vm3, %v2041_v39, %v2032_v26 }
 0x60f   :  { %v2045_v25 = vrot.slane %v1998_v45, %v2810_v2 }
 0x611   :  { %v2007_v19 = vpop.xlane.xlu1 %2006  ;;  %v2050_v34 = vsel %vm759_vm2, %v2049_v37, %v2045_v25 }
 0x612   :  { %v2058_v44 = vrot.slane %v2007_v19, %v2807_v1  ;;  %v2004_v18 = vpop.xlane.xlu0 %2003  ;;  %v2070_v16 = vsel %vm898_vm4, %v2050_v34, %v2069_v54 }
 0x613   :  { %v2054_v8 = vrot.slane %v2004_v18, %v2810_v2 }
 0x615   :  { %v2013_v5 = vpop.xlane.xlu1 %2012  ;;  %v2059_v4 = vsel %vm759_vm2, %v2058_v44, %v2054_v8 }
 0x616   :  { %v2067_v14 = vrot.slane %v2013_v5, %v2807_v1  ;;  %v2010_v56 = vpop.xlane.xlu0 %2009  ;;  %v2071_v40 = vsel %vm900_vm5, %v2059_v4, %v2070_v16 }
 0x617   :  { %v2063_v29 = vrot.slane %v2010_v56, %v2810_v2 }
 0x619   :  { %v2068_v36 = vsel %vm759_vm2, %v2067_v14, %v2063_v29 }
 0x61a   :  { %v2072_v42 = vsel %vm902_vm6, %v2068_v36, %v2071_v40 }
 0x61b   :  { %2075 = vst.msk [vmem:[#allocation2] sm:$0x1f] %vm2074_vm12, %v2072_v42 }
 0x61c   :  { %2399 = shalt.err (!%p2396_p4)
}
 0x61d   :  { %s2400_s30 = scalar_lea.hbm %s3406_s9, 128 }
 0x61e   :  { %p2401_p5 = scmp.ne.s32.totalorder %s3406_s9, %s2400_s30  ;;  %p2404_p6 = scmp.lt.u32.totalorder %s2400_s30, %s3406_s9 }
 0x620   :  { %p2406_p7 = pnand %p2404_p6, %p2401_p5 }
 0x622   :  { %2409 = shalt.err (!%p2406_p7)
}
 0x623   :  { %2085 = dma.vmem_to_hbm [thread:$0]  %s2083_s27, 128, %s3406_s9, [#allocation3]  }
 0x624   :  { %2410 = dma.done.wait [#allocation3], 128  }
 0x625   :  { %2411 = vsyncadd [#allocation3], 4294967168 }
 0x626   :  { %2089 = vsyncpa [#allocation3], 1 }

</bundles_post_ra>
